<compile_context>
chip_gen: v7x
topology: tpu7x:2x2x1
jax: 0.10.0
libtpu: 0.0.40
codegen_flags: <defaults>
</compile_context>

<pallas_src>
import functools

import numpy as np
import jax
import jax.numpy as jnp
from jax import lax
from jax.experimental import pallas as pl
from jax.experimental.pallas import tpu as pltpu

N_BINS = 15
# torch.linspace(0, 1, n_bins + 1) is f32; keep the same boundary values.
_BOUNDS = np.linspace(0.0, 1.0, N_BINS + 1).astype(np.float32)
BIN_LOWERS = tuple(float(x) for x in _BOUNDS[:-1])
BIN_UPPERS = tuple(float(x) for x in _BOUNDS[1:])

LANES = 128
SUBLANES = 8

# Accumulator-row layout (cumulative "conf <= boundary" sums), per core:
CNT0 = 0                      # rows [0, 15):  counts of conf <= upper_b
LAB0 = N_BINS                 # rows [15, 30): label sums over conf <= upper_b
CONF0 = 2 * N_BINS            # rows [30, 45): conf  sums over conf <= upper_b
LE0_CNT = 3 * N_BINS          # row 45: count of conf <= 0 (excluded from bin 0)
LE0_LAB = 3 * N_BINS + 1      # row 46: label sum over conf <= 0
NACC = 3 * N_BINS + 2         # 47 rows of (8, 128) f32 slabs


def _ece_kernel(logits_ref, labels_ref, acc_ref, *, sub_rows):
    """Per-core cumulative binning reduction.

    acc_ref: (NACC, 8, 128) f32 output block, resident across the trailing
    ("arbitrary") grid axis; one block per core (leading "parallel" axis).
    """
    j = pl.program_id(1)

    @pl.when(j == 0)
    def _init():
        acc_ref[...] = jnp.zeros_like(acc_ref)

    tile_rows = logits_ref.shape[0]
    num_sub = tile_rows // sub_rows
    n_vregs = sub_rows // SUBLANES

    one = jnp.float32(1.0)
    zero = jnp.float32(0.0)

    def body(s, carry):
        base = pl.multiple_of(s * sub_rows, sub_rows)
        lg = logits_ref[pl.ds(base, sub_rows), :].astype(jnp.float32)
        lab = labels_ref[pl.ds(base, sub_rows), :].astype(jnp.float32)
        conf = jax.nn.sigmoid(lg)

        # Layout-preserving reshape exposing the native (8, 128) vreg grouping
        # so sum(axis=0) is pure VPU adds (no XLU work in the hot loop).
        conf3 = conf.reshape(n_vregs, SUBLANES, LANES)
        lab3 = lab.reshape(n_vregs, SUBLANES, LANES)

        # Boundaries 0..N_BINS-2: cumulative "<= upper_b" sums via selects
        # (one compare + three selects + three adds per boundary per vreg).
        for b in range(N_BINS - 1):
            le = conf3 <= jnp.float32(BIN_UPPERS[b])
            acc_ref[CNT0 + b] = acc_ref[CNT0 + b] + jnp.sum(
                jnp.where(le, one, zero), axis=0)
            acc_ref[LAB0 + b] = acc_ref[LAB0 + b] + jnp.sum(
                jnp.where(le, lab3, zero), axis=0)
            acc_ref[CONF0 + b] = acc_ref[CONF0 + b] + jnp.sum(
                jnp.where(le, conf3, zero), axis=0)

        # Last boundary (<= 1.0) is always true for sigmoid: plain totals.
        b_last = N_BINS - 1
        acc_ref[CNT0 + b_last] = acc_ref[CNT0 + b_last] + jnp.float32(n_vregs)
        acc_ref[LAB0 + b_last] = acc_ref[LAB0 + b_last] + jnp.sum(lab3, axis=0)
        acc_ref[CONF0 + b_last] = acc_ref[CONF0 + b_last] + jnp.sum(conf3, axis=0)

        # conf <= 0 cumulative (its conf-sum is identically 0 so it is skipped):
        # keeps conf == 0 excluded from bin 0, matching torch's conf.gt(0).
        le0 = conf3 <= zero
        acc_ref[LE0_CNT] = acc_ref[LE0_CNT] + jnp.sum(
            jnp.where(le0, one, zero), axis=0)
        acc_ref[LE0_LAB] = acc_ref[LE0_LAB] + jnp.sum(
            jnp.where(le0, lab3, zero), axis=0)
        return carry

    unroll = 2 if (num_sub >= 2 and num_sub % 2 == 0) else 1
    lax.fori_loop(0, num_sub, body, 0, unroll=unroll)


def _pick_tile_rows(m, max_rows):
    """Largest divisor of m that is <= max_rows and a multiple of 8."""
    d = min(m, max_rows)
    while d >= SUBLANES:
        if m % d == 0 and d % SUBLANES == 0:
            return d
        d -= 1
    return SUBLANES


def _pick_sub_rows(tile_rows, max_sub):
    """Largest multiple of 8 that is <= max_sub and divides tile_rows."""
    sub = SUBLANES
    for cand in range(SUBLANES, min(max_sub, tile_rows) + 1, SUBLANES):
        if tile_rows % cand == 0:
            sub = cand
    return sub


def ece_pallas(logits, labels, *, max_tile_rows=2048, max_sub_rows=32):
    """Runs the Pallas ECE kernel. Returns (ece[1], acc[15], conf[15], cnt[15])."""
    assert logits.shape == labels.shape
    total = int(np.prod(logits.shape))
    # TODO(synk): ragged sizes (total % 1024 != 0) would need a validity mask.
    assert total % (SUBLANES * LANES) == 0, "element count must be a multiple of 1024"
    m = total // LANES

    # 2-way split over the leading "parallel" grid axis (v7x megacore); on
    # 1-TC chips (v5e/v6e) it only adds one extra, negligible block epilogue.
    ncores = 2 if (m % (2 * SUBLANES) == 0 and m >= 2 * SUBLANES) else 1
    m_per_core = m // ncores
    tile_rows = _pick_tile_rows(m_per_core, max_tile_rows)
    steps = m_per_core // tile_rows
    sub_rows = _pick_sub_rows(tile_rows, max_sub_rows)

    logits2 = logits.reshape(m, LANES)
    labels2 = labels.reshape(m, LANES)

    kernel = functools.partial(_ece_kernel, sub_rows=sub_rows)

    partial_slabs = pl.pallas_call(
        kernel,
        out_shape=jax.ShapeDtypeStruct((ncores, NACC, SUBLANES, LANES), jnp.float32),
        grid_spec=pltpu.PrefetchScalarGridSpec(
            num_scalar_prefetch=0,
            grid=(ncores, steps),
            in_specs=[
                pl.BlockSpec((tile_rows, LANES), lambda i, j: (i * steps + j, 0)),
                pl.BlockSpec((tile_rows, LANES), lambda i, j: (i * steps + j, 0)),
            ],
            # Per-core resident accumulator block: index depends only on the
            # parallel axis, so each TC owns a disjoint output block.
            out_specs=pl.BlockSpec((None, NACC, SUBLANES, LANES),
                                   lambda i, j: (i, 0, 0, 0)),
        ),
        compiler_params=pltpu.CompilerParams(
            dimension_semantics=("parallel", "arbitrary")),
    )(logits2, labels2)

    # Per-core combine + cumulative -> per-bin differences + ECE math.
    # (47 scalars; plain jnp in the wrapper, as suggested by the review.)
    sums = jnp.sum(partial_slabs, axis=(0, 2, 3))                  # (NACC,)
    cum_cnt = sums[CNT0:CNT0 + N_BINS]
    cum_lab = sums[LAB0:LAB0 + N_BINS]
    cum_conf = sums[CONF0:CONF0 + N_BINS]
    prev_cnt = jnp.concatenate([sums[LE0_CNT][None], cum_cnt[:-1]])
    prev_lab = jnp.concatenate([sums[LE0_LAB][None], cum_lab[:-1]])
    prev_conf = jnp.concatenate([jnp.zeros((1,), jnp.float32), cum_conf[:-1]])

    cnt = cum_cnt - prev_cnt             # count of lower < conf <= upper
    lab_sum = cum_lab - prev_lab
    conf_sum = cum_conf - prev_conf

    nonempty = cnt > 0.0
    denom = jnp.where(nonempty, cnt, 1.0)
    acc_bin = lab_sum / denom            # accuracy_in_bin
    conf_bin = conf_sum / denom          # avg_confidence_in_bin
    prop = cnt / jnp.float32(total)      # prop_in_bin
    ece = jnp.sum(jnp.where(nonempty, jnp.abs(conf_bin - acc_bin) * prop, 0.0))
    return ece.reshape(1), acc_bin, conf_bin, cnt


def ece_forward(logits, labels):
    """Mirrors ECELoss.forward: returns (ece, acc_list, len(conf_list))."""
    ece, acc, conf, cnt = ece_pallas(logits, labels)
    cnt_np = np.asarray(jax.block_until_ready(cnt))
    acc_np = np.asarray(acc)
    conf_np = np.asarray(conf)
    acc_list = [float(a) for a, c in zip(acc_np, cnt_np) if c > 0]
    conf_list = [float(v) for v, c in zip(conf_np, cnt_np) if c > 0]
    print('acc', acc_list)
    print('conf', conf_list)
    return ece, acc_list, len(conf_list)


if __name__ == "__main__":
    key = jax.random.PRNGKey(0)
    k1, k2 = jax.random.split(key)
    B, C, H, W = 2, 4, 16, 16
    logits = jax.random.normal(k1, (B, C, H, W), dtype=jnp.float32) * 2.0
    labels = (jax.random.uniform(k2, (B, C, H, W)) > 0.5).astype(jnp.float32)

    ece, acc_list, n_conf = ece_forward(logits, labels)
    ece = jax.block_until_ready(ece)

    # Pure-JAX/numpy reference check of the forward semantics.
    conf_np = np.asarray(jax.nn.sigmoid(logits)).reshape(-1)
    lab_np = np.asarray(labels).reshape(-1)
    ece_ref = 0.0
    for lo, hi in zip(BIN_LOWERS, BIN_UPPERS):
        in_bin = (conf_np > lo) & (conf_np <= hi)
        prop = in_bin.mean()
        if prop > 0:
            ece_ref += abs(conf_np[in_bin].mean() - lab_np[in_bin].mean()) * prop
    assert np.allclose(float(np.asarray(ece)[0]), ece_ref, atol=1e-4), (ece, ece_ref)

    print("KERNEL_OK")
</pallas_src>

<mosaic_0001>
module attributes {stable_mosaic.version = 11 : i64} {
  func.func @_ece_kernel(%arg0: i32, %arg1: i32, %arg2: memref<8x128xf32, #tpu.memory_space<vmem>>, %arg3: memref<8x128xf32, #tpu.memory_space<vmem>>, %arg4: memref<1x47x8x128xf32, #tpu.memory_space<vmem>>) attributes {dimension_semantics = [#tpu.dimension_semantics<parallel>, #tpu.dimension_semantics<arbitrary>], iteration_bounds = array<i64: 2, 1>, scalar_prefetch = 0 : i64, scratch_operands = 0 : i64, tpu.core_type = #tpu.core_type<tc>, window_params = [{transform_indices = @transform_0, window_bounds = array<i64: 8, 128>}, {transform_indices = @transform_1, window_bounds = array<i64: 8, 128>}, {transform_indices = @transform_2, window_bounds = array<i64: 1, 47, 8, 128>}]} {
    %c0_i32 = arith.constant 0 : i32
    %0 = arith.cmpi eq, %arg1, %c0_i32 : i32
    %1 = arith.extui %0 : i1 to i32
    %c0_i32_0 = arith.constant 0 : i32
    %2 = arith.cmpi ne, %1, %c0_i32_0 : i32
    scf.if %2 {
      %cst_396 = arith.constant 0.000000e+00 : f32
      %478 = vector.broadcast %cst_396 : f32 to vector<47x8x128xf32>
      %c0_397 = arith.constant 0 : index
      %c0_398 = arith.constant 0 : index
      %c0_399 = arith.constant 0 : index
      %c0_400 = arith.constant 0 : index
      %479 = vector.load %arg4[%c0_397, %c0_398, %c0_399, %c0_400] : memref<1x47x8x128xf32, #tpu.memory_space<vmem>>, vector<1x47x8x128xf32>
      %480 = vector.shape_cast %479 : vector<1x47x8x128xf32> to vector<47x8x128xf32>
      %481 = vector.shape_cast %478 : vector<47x8x128xf32> to vector<1x47x8x128xf32>
      tpu.vector_store %arg4[%c0_397, %c0_398, %c0_399, %c0_400], %481 {strides = array<i32>} : memref<1x47x8x128xf32, #tpu.memory_space<vmem>>, vector<1x47x8x128xf32>,
    } else {
    }
    %cst = arith.constant 1.000000e+00 : f32
    %cst_1 = arith.constant 0.000000e+00 : f32
    %c0_i32_2 = arith.constant 0 : i32
    %c8_i32 = arith.constant 8 : i32
    %3 = arith.muli %c0_i32_2, %c8_i32 : i32
    %4 = tpu.assume_multiple %3, 8 : i32
    %5 = arith.index_cast %4 : i32 to index
    %c0 = arith.constant 0 : index
    %6 = vector.load %arg2[%5, %c0] : memref<8x128xf32, #tpu.memory_space<vmem>>, vector<8x128xf32>
    %7 = arith.index_cast %4 : i32 to index
    %c0_3 = arith.constant 0 : index
    %8 = vector.load %arg3[%7, %c0_3] : memref<8x128xf32, #tpu.memory_space<vmem>>, vector<8x128xf32>
    %9 = arith.negf %6 : vector<8x128xf32>
    %10 = math.exp %9 : vector<8x128xf32>
    %cst_4 = arith.constant 1.000000e+00 : f32
    %11 = vector.broadcast %cst_4 : f32 to vector<8x128xf32>
    %12 = arith.addf %11, %10 : vector<8x128xf32>
    %13 = arith.divf %11, %12 : vector<8x128xf32>
    %14 = vector.shape_cast %13 : vector<8x128xf32> to vector<1x8x128xf32>
    %15 = vector.shape_cast %8 : vector<8x128xf32> to vector<1x8x128xf32>
    %cst_5 = arith.constant 0.0666666701 : f32
    %16 = vector.broadcast %cst_5 : f32 to vector<1x8x128xf32>
    %17 = arith.cmpf ole, %14, %16 : vector<1x8x128xf32>
    %c0_6 = arith.constant 0 : index
    %c0_7 = arith.constant 0 : index
    %c0_8 = arith.constant 0 : index
    %c0_9 = arith.constant 0 : index
    %18 = vector.load %arg4[%c0_6, %c0_7, %c0_8, %c0_9] : memref<1x47x8x128xf32, #tpu.memory_space<vmem>>, vector<1x1x8x128xf32>
    %19 = vector.shape_cast %18 : vector<1x1x8x128xf32> to vector<8x128xf32>
    %20 = vector.broadcast %cst : f32 to vector<1x8x128xf32>
    %21 = vector.broadcast %cst_1 : f32 to vector<1x8x128xf32>
    %22 = arith.select %17, %20, %21 : vector<1x8x128xi1>, vector<1x8x128xf32>
    %cst_10 = arith.constant dense<0.000000e+00> : vector<8x128xf32>
    %23 = vector.multi_reduction <add>, %22, %cst_10 [0] : vector<1x8x128xf32> to vector<8x128xf32>
    %24 = arith.addf %19, %23 : vector<8x128xf32>
    %c0_11 = arith.constant 0 : index
    %c0_12 = arith.constant 0 : index
    %c0_13 = arith.constant 0 : index
    %c0_14 = arith.constant 0 : index
    %25 = vector.load %arg4[%c0_11, %c0_12, %c0_13, %c0_14] : memref<1x47x8x128xf32, #tpu.memory_space<vmem>>, vector<1x1x8x128xf32>
    %26 = vector.shape_cast %25 : vector<1x1x8x128xf32> to vector<8x128xf32>
    %27 = vector.shape_cast %24 : vector<8x128xf32> to vector<1x1x8x128xf32>
    tpu.vector_store %arg4[%c0_11, %c0_12, %c0_13, %c0_14], %27 {strides = array<i32>} : memref<1x47x8x128xf32, #tpu.memory_space<vmem>>, vector<1x1x8x128xf32>,
    %c0_15 = arith.constant 0 : index
    %c15 = arith.constant 15 : index
    %c0_16 = arith.constant 0 : index
    %c0_17 = arith.constant 0 : index
    %28 = vector.load %arg4[%c0_15, %c15, %c0_16, %c0_17] : memref<1x47x8x128xf32, #tpu.memory_space<vmem>>, vector<1x1x8x128xf32>
    %29 = vector.shape_cast %28 : vector<1x1x8x128xf32> to vector<8x128xf32>
    %30 = vector.broadcast %cst_1 : f32 to vector<1x8x128xf32>
    %31 = arith.select %17, %15, %30 : vector<1x8x128xi1>, vector<1x8x128xf32>
    %cst_18 = arith.constant dense<0.000000e+00> : vector<8x128xf32>
    %32 = vector.multi_reduction <add>, %31, %cst_18 [0] : vector<1x8x128xf32> to vector<8x128xf32>
    %33 = arith.addf %29, %32 : vector<8x128xf32>
    %c0_19 = arith.constant 0 : index
    %c15_20 = arith.constant 15 : index
    %c0_21 = arith.constant 0 : index
    %c0_22 = arith.constant 0 : index
    %34 = vector.load %arg4[%c0_19, %c15_20, %c0_21, %c0_22] : memref<1x47x8x128xf32, #tpu.memory_space<vmem>>, vector<1x1x8x128xf32>
    %35 = vector.shape_cast %34 : vector<1x1x8x128xf32> to vector<8x128xf32>
    %36 = vector.shape_cast %33 : vector<8x128xf32> to vector<1x1x8x128xf32>
    tpu.vector_store %arg4[%c0_19, %c15_20, %c0_21, %c0_22], %36 {strides = array<i32>} : memref<1x47x8x128xf32, #tpu.memory_space<vmem>>, vector<1x1x8x128xf32>,
    %c0_23 = arith.constant 0 : index
    %c30 = arith.constant 30 : index
    %c0_24 = arith.constant 0 : index
    %c0_25 = arith.constant 0 : index
    %37 = vector.load %arg4[%c0_23, %c30, %c0_24, %c0_25] : memref<1x47x8x128xf32, #tpu.memory_space<vmem>>, vector<1x1x8x128xf32>
    %38 = vector.shape_cast %37 : vector<1x1x8x128xf32> to vector<8x128xf32>
    %39 = vector.broadcast %cst_1 : f32 to vector<1x8x128xf32>
    %40 = arith.select %17, %14, %39 : vector<1x8x128xi1>, vector<1x8x128xf32>
    %cst_26 = arith.constant dense<0.000000e+00> : vector<8x128xf32>
    %41 = vector.multi_reduction <add>, %40, %cst_26 [0] : vector<1x8x128xf32> to vector<8x128xf32>
    %42 = arith.addf %38, %41 : vector<8x128xf32>
    %c0_27 = arith.constant 0 : index
    %c30_28 = arith.constant 30 : index
    %c0_29 = arith.constant 0 : index
    %c0_30 = arith.constant 0 : index
    %43 = vector.load %arg4[%c0_27, %c30_28, %c0_29, %c0_30] : memref<1x47x8x128xf32, #tpu.memory_space<vmem>>, vector<1x1x8x128xf32>
    %44 = vector.shape_cast %43 : vector<1x1x8x128xf32> to vector<8x128xf32>
    %45 = vector.shape_cast %42 : vector<8x128xf32> to vector<1x1x8x128xf32>
    tpu.vector_store %arg4[%c0_27, %c30_28, %c0_29, %c0_30], %45 {strides = array<i32>} : memref<1x47x8x128xf32, #tpu.memory_space<vmem>>, vector<1x1x8x128xf32>,
    %cst_31 = arith.constant 0.13333334 : f32
    %46 = vector.broadcast %cst_31 : f32 to vector<1x8x128xf32>
    %47 = arith.cmpf ole, %14, %46 : vector<1x8x128xf32>
    %c0_32 = arith.constant 0 : index
    %c1 = arith.constant 1 : index
    %c0_33 = arith.constant 0 : index
    %c0_34 = arith.constant 0 : index
    %48 = vector.load %arg4[%c0_32, %c1, %c0_33, %c0_34] : memref<1x47x8x128xf32, #tpu.memory_space<vmem>>, vector<1x1x8x128xf32>
    %49 = vector.shape_cast %48 : vector<1x1x8x128xf32> to vector<8x128xf32>
    %50 = vector.broadcast %cst : f32 to vector<1x8x128xf32>
    %51 = vector.broadcast %cst_1 : f32 to vector<1x8x128xf32>
    %52 = arith.select %47, %50, %51 : vector<1x8x128xi1>, vector<1x8x128xf32>
    %cst_35 = arith.constant dense<0.000000e+00> : vector<8x128xf32>
    %53 = vector.multi_reduction <add>, %52, %cst_35 [0] : vector<1x8x128xf32> to vector<8x128xf32>
    %54 = arith.addf %49, %53 : vector<8x128xf32>
    %c0_36 = arith.constant 0 : index
    %c1_37 = arith.constant 1 : index
    %c0_38 = arith.constant 0 : index
    %c0_39 = arith.constant 0 : index
    %55 = vector.load %arg4[%c0_36, %c1_37, %c0_38, %c0_39] : memref<1x47x8x128xf32, #tpu.memory_space<vmem>>, vector<1x1x8x128xf32>
    %56 = vector.shape_cast %55 : vector<1x1x8x128xf32> to vector<8x128xf32>
    %57 = vector.shape_cast %54 : vector<8x128xf32> to vector<1x1x8x128xf32>
    tpu.vector_store %arg4[%c0_36, %c1_37, %c0_38, %c0_39], %57 {strides = array<i32>} : memref<1x47x8x128xf32, #tpu.memory_space<vmem>>, vector<1x1x8x128xf32>,
    %c0_40 = arith.constant 0 : index
    %c16 = arith.constant 16 : index
    %c0_41 = arith.constant 0 : index
    %c0_42 = arith.constant 0 : index
    %58 = vector.load %arg4[%c0_40, %c16, %c0_41, %c0_42] : memref<1x47x8x128xf32, #tpu.memory_space<vmem>>, vector<1x1x8x128xf32>
    %59 = vector.shape_cast %58 : vector<1x1x8x128xf32> to vector<8x128xf32>
    %60 = vector.broadcast %cst_1 : f32 to vector<1x8x128xf32>
    %61 = arith.select %47, %15, %60 : vector<1x8x128xi1>, vector<1x8x128xf32>
    %cst_43 = arith.constant dense<0.000000e+00> : vector<8x128xf32>
    %62 = vector.multi_reduction <add>, %61, %cst_43 [0] : vector<1x8x128xf32> to vector<8x128xf32>
    %63 = arith.addf %59, %62 : vector<8x128xf32>
    %c0_44 = arith.constant 0 : index
    %c16_45 = arith.constant 16 : index
    %c0_46 = arith.constant 0 : index
    %c0_47 = arith.constant 0 : index
    %64 = vector.load %arg4[%c0_44, %c16_45, %c0_46, %c0_47] : memref<1x47x8x128xf32, #tpu.memory_space<vmem>>, vector<1x1x8x128xf32>
    %65 = vector.shape_cast %64 : vector<1x1x8x128xf32> to vector<8x128xf32>
    %66 = vector.shape_cast %63 : vector<8x128xf32> to vector<1x1x8x128xf32>
    tpu.vector_store %arg4[%c0_44, %c16_45, %c0_46, %c0_47], %66 {strides = array<i32>} : memref<1x47x8x128xf32, #tpu.memory_space<vmem>>, vector<1x1x8x128xf32>,
    %c0_48 = arith.constant 0 : index
    %c31 = arith.constant 31 : index
    %c0_49 = arith.constant 0 : index
    %c0_50 = arith.constant 0 : index
    %67 = vector.load %arg4[%c0_48, %c31, %c0_49, %c0_50] : memref<1x47x8x128xf32, #tpu.memory_space<vmem>>, vector<1x1x8x128xf32>
    %68 = vector.shape_cast %67 : vector<1x1x8x128xf32> to vector<8x128xf32>
    %69 = vector.broadcast %cst_1 : f32 to vector<1x8x128xf32>
    %70 = arith.select %47, %14, %69 : vector<1x8x128xi1>, vector<1x8x128xf32>
    %cst_51 = arith.constant dense<0.000000e+00> : vector<8x128xf32>
    %71 = vector.multi_reduction <add>, %70, %cst_51 [0] : vector<1x8x128xf32> to vector<8x128xf32>
    %72 = arith.addf %68, %71 : vector<8x128xf32>
    %c0_52 = arith.constant 0 : index
    %c31_53 = arith.constant 31 : index
    %c0_54 = arith.constant 0 : index
    %c0_55 = arith.constant 0 : index
    %73 = vector.load %arg4[%c0_52, %c31_53, %c0_54, %c0_55] : memref<1x47x8x128xf32, #tpu.memory_space<vmem>>, vector<1x1x8x128xf32>
    %74 = vector.shape_cast %73 : vector<1x1x8x128xf32> to vector<8x128xf32>
    %75 = vector.shape_cast %72 : vector<8x128xf32> to vector<1x1x8x128xf32>
    tpu.vector_store %arg4[%c0_52, %c31_53, %c0_54, %c0_55], %75 {strides = array<i32>} : memref<1x47x8x128xf32, #tpu.memory_space<vmem>>, vector<1x1x8x128xf32>,
    %cst_56 = arith.constant 2.000000e-01 : f32
    %76 = vector.broadcast %cst_56 : f32 to vector<1x8x128xf32>
    %77 = arith.cmpf ole, %14, %76 : vector<1x8x128xf32>
    %c0_57 = arith.constant 0 : index
    %c2 = arith.constant 2 : index
    %c0_58 = arith.constant 0 : index
    %c0_59 = arith.constant 0 : index
    %78 = vector.load %arg4[%c0_57, %c2, %c0_58, %c0_59] : memref<1x47x8x128xf32, #tpu.memory_space<vmem>>, vector<1x1x8x128xf32>
    %79 = vector.shape_cast %78 : vector<1x1x8x128xf32> to vector<8x128xf32>
    %80 = vector.broadcast %cst : f32 to vector<1x8x128xf32>
    %81 = vector.broadcast %cst_1 : f32 to vector<1x8x128xf32>
    %82 = arith.select %77, %80, %81 : vector<1x8x128xi1>, vector<1x8x128xf32>
    %cst_60 = arith.constant dense<0.000000e+00> : vector<8x128xf32>
    %83 = vector.multi_reduction <add>, %82, %cst_60 [0] : vector<1x8x128xf32> to vector<8x128xf32>
    %84 = arith.addf %79, %83 : vector<8x128xf32>
    %c0_61 = arith.constant 0 : index
    %c2_62 = arith.constant 2 : index
    %c0_63 = arith.constant 0 : index
    %c0_64 = arith.constant 0 : index
    %85 = vector.load %arg4[%c0_61, %c2_62, %c0_63, %c0_64] : memref<1x47x8x128xf32, #tpu.memory_space<vmem>>, vector<1x1x8x128xf32>
    %86 = vector.shape_cast %85 : vector<1x1x8x128xf32> to vector<8x128xf32>
    %87 = vector.shape_cast %84 : vector<8x128xf32> to vector<1x1x8x128xf32>
    tpu.vector_store %arg4[%c0_61, %c2_62, %c0_63, %c0_64], %87 {strides = array<i32>} : memref<1x47x8x128xf32, #tpu.memory_space<vmem>>, vector<1x1x8x128xf32>,
    %c0_65 = arith.constant 0 : index
    %c17 = arith.constant 17 : index
    %c0_66 = arith.constant 0 : index
    %c0_67 = arith.constant 0 : index
    %88 = vector.load %arg4[%c0_65, %c17, %c0_66, %c0_67] : memref<1x47x8x128xf32, #tpu.memory_space<vmem>>, vector<1x1x8x128xf32>
    %89 = vector.shape_cast %88 : vector<1x1x8x128xf32> to vector<8x128xf32>
    %90 = vector.broadcast %cst_1 : f32 to vector<1x8x128xf32>
    %91 = arith.select %77, %15, %90 : vector<1x8x128xi1>, vector<1x8x128xf32>
    %cst_68 = arith.constant dense<0.000000e+00> : vector<8x128xf32>
    %92 = vector.multi_reduction <add>, %91, %cst_68 [0] : vector<1x8x128xf32> to vector<8x128xf32>
    %93 = arith.addf %89, %92 : vector<8x128xf32>
    %c0_69 = arith.constant 0 : index
    %c17_70 = arith.constant 17 : index
    %c0_71 = arith.constant 0 : index
    %c0_72 = arith.constant 0 : index
    %94 = vector.load %arg4[%c0_69, %c17_70, %c0_71, %c0_72] : memref<1x47x8x128xf32, #tpu.memory_space<vmem>>, vector<1x1x8x128xf32>
    %95 = vector.shape_cast %94 : vector<1x1x8x128xf32> to vector<8x128xf32>
    %96 = vector.shape_cast %93 : vector<8x128xf32> to vector<1x1x8x128xf32>
    tpu.vector_store %arg4[%c0_69, %c17_70, %c0_71, %c0_72], %96 {strides = array<i32>} : memref<1x47x8x128xf32, #tpu.memory_space<vmem>>, vector<1x1x8x128xf32>,
    %c0_73 = arith.constant 0 : index
    %c32 = arith.constant 32 : index
    %c0_74 = arith.constant 0 : index
    %c0_75 = arith.constant 0 : index
    %97 = vector.load %arg4[%c0_73, %c32, %c0_74, %c0_75] : memref<1x47x8x128xf32, #tpu.memory_space<vmem>>, vector<1x1x8x128xf32>
    %98 = vector.shape_cast %97 : vector<1x1x8x128xf32> to vector<8x128xf32>
    %99 = vector.broadcast %cst_1 : f32 to vector<1x8x128xf32>
    %100 = arith.select %77, %14, %99 : vector<1x8x128xi1>, vector<1x8x128xf32>
    %cst_76 = arith.constant dense<0.000000e+00> : vector<8x128xf32>
    %101 = vector.multi_reduction <add>, %100, %cst_76 [0] : vector<1x8x128xf32> to vector<8x128xf32>
    %102 = arith.addf %98, %101 : vector<8x128xf32>
    %c0_77 = arith.constant 0 : index
    %c32_78 = arith.constant 32 : index
    %c0_79 = arith.constant 0 : index
    %c0_80 = arith.constant 0 : index
    %103 = vector.load %arg4[%c0_77, %c32_78, %c0_79, %c0_80] : memref<1x47x8x128xf32, #tpu.memory_space<vmem>>, vector<1x1x8x128xf32>
    %104 = vector.shape_cast %103 : vector<1x1x8x128xf32> to vector<8x128xf32>
    %105 = vector.shape_cast %102 : vector<8x128xf32> to vector<1x1x8x128xf32>
    tpu.vector_store %arg4[%c0_77, %c32_78, %c0_79, %c0_80], %105 {strides = array<i32>} : memref<1x47x8x128xf32, #tpu.memory_space<vmem>>, vector<1x1x8x128xf32>,
    %cst_81 = arith.constant 0.266666681 : f32
    %106 = vector.broadcast %cst_81 : f32 to vector<1x8x128xf32>
    %107 = arith.cmpf ole, %14, %106 : vector<1x8x128xf32>
    %c0_82 = arith.constant 0 : index
    %c3 = arith.constant 3 : index
    %c0_83 = arith.constant 0 : index
    %c0_84 = arith.constant 0 : index
    %108 = vector.load %arg4[%c0_82, %c3, %c0_83, %c0_84] : memref<1x47x8x128xf32, #tpu.memory_space<vmem>>, vector<1x1x8x128xf32>
    %109 = vector.shape_cast %108 : vector<1x1x8x128xf32> to vector<8x128xf32>
    %110 = vector.broadcast %cst : f32 to vector<1x8x128xf32>
    %111 = vector.broadcast %cst_1 : f32 to vector<1x8x128xf32>
    %112 = arith.select %107, %110, %111 : vector<1x8x128xi1>, vector<1x8x128xf32>
    %cst_85 = arith.constant dense<0.000000e+00> : vector<8x128xf32>
    %113 = vector.multi_reduction <add>, %112, %cst_85 [0] : vector<1x8x128xf32> to vector<8x128xf32>
    %114 = arith.addf %109, %113 : vector<8x128xf32>
    %c0_86 = arith.constant 0 : index
    %c3_87 = arith.constant 3 : index
    %c0_88 = arith.constant 0 : index
    %c0_89 = arith.constant 0 : index
    %115 = vector.load %arg4[%c0_86, %c3_87, %c0_88, %c0_89] : memref<1x47x8x128xf32, #tpu.memory_space<vmem>>, vector<1x1x8x128xf32>
    %116 = vector.shape_cast %115 : vector<1x1x8x128xf32> to vector<8x128xf32>
    %117 = vector.shape_cast %114 : vector<8x128xf32> to vector<1x1x8x128xf32>
    tpu.vector_store %arg4[%c0_86, %c3_87, %c0_88, %c0_89], %117 {strides = array<i32>} : memref<1x47x8x128xf32, #tpu.memory_space<vmem>>, vector<1x1x8x128xf32>,
    %c0_90 = arith.constant 0 : index
    %c18 = arith.constant 18 : index
    %c0_91 = arith.constant 0 : index
    %c0_92 = arith.constant 0 : index
    %118 = vector.load %arg4[%c0_90, %c18, %c0_91, %c0_92] : memref<1x47x8x128xf32, #tpu.memory_space<vmem>>, vector<1x1x8x128xf32>
    %119 = vector.shape_cast %118 : vector<1x1x8x128xf32> to vector<8x128xf32>
    %120 = vector.broadcast %cst_1 : f32 to vector<1x8x128xf32>
    %121 = arith.select %107, %15, %120 : vector<1x8x128xi1>, vector<1x8x128xf32>
    %cst_93 = arith.constant dense<0.000000e+00> : vector<8x128xf32>
    %122 = vector.multi_reduction <add>, %121, %cst_93 [0] : vector<1x8x128xf32> to vector<8x128xf32>
    %123 = arith.addf %119, %122 : vector<8x128xf32>
    %c0_94 = arith.constant 0 : index
    %c18_95 = arith.constant 18 : index
    %c0_96 = arith.constant 0 : index
    %c0_97 = arith.constant 0 : index
    %124 = vector.load %arg4[%c0_94, %c18_95, %c0_96, %c0_97] : memref<1x47x8x128xf32, #tpu.memory_space<vmem>>, vector<1x1x8x128xf32>
    %125 = vector.shape_cast %124 : vector<1x1x8x128xf32> to vector<8x128xf32>
    %126 = vector.shape_cast %123 : vector<8x128xf32> to vector<1x1x8x128xf32>
    tpu.vector_store %arg4[%c0_94, %c18_95, %c0_96, %c0_97], %126 {strides = array<i32>} : memref<1x47x8x128xf32, #tpu.memory_space<vmem>>, vector<1x1x8x128xf32>,
    %c0_98 = arith.constant 0 : index
    %c33 = arith.constant 33 : index
    %c0_99 = arith.constant 0 : index
    %c0_100 = arith.constant 0 : index
    %127 = vector.load %arg4[%c0_98, %c33, %c0_99, %c0_100] : memref<1x47x8x128xf32, #tpu.memory_space<vmem>>, vector<1x1x8x128xf32>
    %128 = vector.shape_cast %127 : vector<1x1x8x128xf32> to vector<8x128xf32>
    %129 = vector.broadcast %cst_1 : f32 to vector<1x8x128xf32>
    %130 = arith.select %107, %14, %129 : vector<1x8x128xi1>, vector<1x8x128xf32>
    %cst_101 = arith.constant dense<0.000000e+00> : vector<8x128xf32>
    %131 = vector.multi_reduction <add>, %130, %cst_101 [0] : vector<1x8x128xf32> to vector<8x128xf32>
    %132 = arith.addf %128, %131 : vector<8x128xf32>
    %c0_102 = arith.constant 0 : index
    %c33_103 = arith.constant 33 : index
    %c0_104 = arith.constant 0 : index
    %c0_105 = arith.constant 0 : index
    %133 = vector.load %arg4[%c0_102, %c33_103, %c0_104, %c0_105] : memref<1x47x8x128xf32, #tpu.memory_space<vmem>>, vector<1x1x8x128xf32>
    %134 = vector.shape_cast %133 : vector<1x1x8x128xf32> to vector<8x128xf32>
    %135 = vector.shape_cast %132 : vector<8x128xf32> to vector<1x1x8x128xf32>
    tpu.vector_store %arg4[%c0_102, %c33_103, %c0_104, %c0_105], %135 {strides = array<i32>} : memref<1x47x8x128xf32, #tpu.memory_space<vmem>>, vector<1x1x8x128xf32>,
    %cst_106 = arith.constant 0.333333343 : f32
    %136 = vector.broadcast %cst_106 : f32 to vector<1x8x128xf32>
    %137 = arith.cmpf ole, %14, %136 : vector<1x8x128xf32>
    %c0_107 = arith.constant 0 : index
    %c4 = arith.constant 4 : index
    %c0_108 = arith.constant 0 : index
    %c0_109 = arith.constant 0 : index
    %138 = vector.load %arg4[%c0_107, %c4, %c0_108, %c0_109] : memref<1x47x8x128xf32, #tpu.memory_space<vmem>>, vector<1x1x8x128xf32>
    %139 = vector.shape_cast %138 : vector<1x1x8x128xf32> to vector<8x128xf32>
    %140 = vector.broadcast %cst : f32 to vector<1x8x128xf32>
    %141 = vector.broadcast %cst_1 : f32 to vector<1x8x128xf32>
    %142 = arith.select %137, %140, %141 : vector<1x8x128xi1>, vector<1x8x128xf32>
    %cst_110 = arith.constant dense<0.000000e+00> : vector<8x128xf32>
    %143 = vector.multi_reduction <add>, %142, %cst_110 [0] : vector<1x8x128xf32> to vector<8x128xf32>
    %144 = arith.addf %139, %143 : vector<8x128xf32>
    %c0_111 = arith.constant 0 : index
    %c4_112 = arith.constant 4 : index
    %c0_113 = arith.constant 0 : index
    %c0_114 = arith.constant 0 : index
    %145 = vector.load %arg4[%c0_111, %c4_112, %c0_113, %c0_114] : memref<1x47x8x128xf32, #tpu.memory_space<vmem>>, vector<1x1x8x128xf32>
    %146 = vector.shape_cast %145 : vector<1x1x8x128xf32> to vector<8x128xf32>
    %147 = vector.shape_cast %144 : vector<8x128xf32> to vector<1x1x8x128xf32>
    tpu.vector_store %arg4[%c0_111, %c4_112, %c0_113, %c0_114], %147 {strides = array<i32>} : memref<1x47x8x128xf32, #tpu.memory_space<vmem>>, vector<1x1x8x128xf32>,
    %c0_115 = arith.constant 0 : index
    %c19 = arith.constant 19 : index
    %c0_116 = arith.constant 0 : index
    %c0_117 = arith.constant 0 : index
    %148 = vector.load %arg4[%c0_115, %c19, %c0_116, %c0_117] : memref<1x47x8x128xf32, #tpu.memory_space<vmem>>, vector<1x1x8x128xf32>
    %149 = vector.shape_cast %148 : vector<1x1x8x128xf32> to vector<8x128xf32>
    %150 = vector.broadcast %cst_1 : f32 to vector<1x8x128xf32>
    %151 = arith.select %137, %15, %150 : vector<1x8x128xi1>, vector<1x8x128xf32>
    %cst_118 = arith.constant dense<0.000000e+00> : vector<8x128xf32>
    %152 = vector.multi_reduction <add>, %151, %cst_118 [0] : vector<1x8x128xf32> to vector<8x128xf32>
    %153 = arith.addf %149, %152 : vector<8x128xf32>
    %c0_119 = arith.constant 0 : index
    %c19_120 = arith.constant 19 : index
    %c0_121 = arith.constant 0 : index
    %c0_122 = arith.constant 0 : index
    %154 = vector.load %arg4[%c0_119, %c19_120, %c0_121, %c0_122] : memref<1x47x8x128xf32, #tpu.memory_space<vmem>>, vector<1x1x8x128xf32>
    %155 = vector.shape_cast %154 : vector<1x1x8x128xf32> to vector<8x128xf32>
    %156 = vector.shape_cast %153 : vector<8x128xf32> to vector<1x1x8x128xf32>
    tpu.vector_store %arg4[%c0_119, %c19_120, %c0_121, %c0_122], %156 {strides = array<i32>} : memref<1x47x8x128xf32, #tpu.memory_space<vmem>>, vector<1x1x8x128xf32>,
    %c0_123 = arith.constant 0 : index
    %c34 = arith.constant 34 : index
    %c0_124 = arith.constant 0 : index
    %c0_125 = arith.constant 0 : index
    %157 = vector.load %arg4[%c0_123, %c34, %c0_124, %c0_125] : memref<1x47x8x128xf32, #tpu.memory_space<vmem>>, vector<1x1x8x128xf32>
    %158 = vector.shape_cast %157 : vector<1x1x8x128xf32> to vector<8x128xf32>
    %159 = vector.broadcast %cst_1 : f32 to vector<1x8x128xf32>
    %160 = arith.select %137, %14, %159 : vector<1x8x128xi1>, vector<1x8x128xf32>
    %cst_126 = arith.constant dense<0.000000e+00> : vector<8x128xf32>
    %161 = vector.multi_reduction <add>, %160, %cst_126 [0] : vector<1x8x128xf32> to vector<8x128xf32>
    %162 = arith.addf %158, %161 : vector<8x128xf32>
    %c0_127 = arith.constant 0 : index
    %c34_128 = arith.constant 34 : index
    %c0_129 = arith.constant 0 : index
    %c0_130 = arith.constant 0 : index
    %163 = vector.load %arg4[%c0_127, %c34_128, %c0_129, %c0_130] : memref<1x47x8x128xf32, #tpu.memory_space<vmem>>, vector<1x1x8x128xf32>
    %164 = vector.shape_cast %163 : vector<1x1x8x128xf32> to vector<8x128xf32>
    %165 = vector.shape_cast %162 : vector<8x128xf32> to vector<1x1x8x128xf32>
    tpu.vector_store %arg4[%c0_127, %c34_128, %c0_129, %c0_130], %165 {strides = array<i32>} : memref<1x47x8x128xf32, #tpu.memory_space<vmem>>, vector<1x1x8x128xf32>,
    %cst_131 = arith.constant 4.000000e-01 : f32
    %166 = vector.broadcast %cst_131 : f32 to vector<1x8x128xf32>
    %167 = arith.cmpf ole, %14, %166 : vector<1x8x128xf32>
    %c0_132 = arith.constant 0 : index
    %c5 = arith.constant 5 : index
    %c0_133 = arith.constant 0 : index
    %c0_134 = arith.constant 0 : index
    %168 = vector.load %arg4[%c0_132, %c5, %c0_133, %c0_134] : memref<1x47x8x128xf32, #tpu.memory_space<vmem>>, vector<1x1x8x128xf32>
    %169 = vector.shape_cast %168 : vector<1x1x8x128xf32> to vector<8x128xf32>
    %170 = vector.broadcast %cst : f32 to vector<1x8x128xf32>
    %171 = vector.broadcast %cst_1 : f32 to vector<1x8x128xf32>
    %172 = arith.select %167, %170, %171 : vector<1x8x128xi1>, vector<1x8x128xf32>
    %cst_135 = arith.constant dense<0.000000e+00> : vector<8x128xf32>
    %173 = vector.multi_reduction <add>, %172, %cst_135 [0] : vector<1x8x128xf32> to vector<8x128xf32>
    %174 = arith.addf %169, %173 : vector<8x128xf32>
    %c0_136 = arith.constant 0 : index
    %c5_137 = arith.constant 5 : index
    %c0_138 = arith.constant 0 : index
    %c0_139 = arith.constant 0 : index
    %175 = vector.load %arg4[%c0_136, %c5_137, %c0_138, %c0_139] : memref<1x47x8x128xf32, #tpu.memory_space<vmem>>, vector<1x1x8x128xf32>
    %176 = vector.shape_cast %175 : vector<1x1x8x128xf32> to vector<8x128xf32>
    %177 = vector.shape_cast %174 : vector<8x128xf32> to vector<1x1x8x128xf32>
    tpu.vector_store %arg4[%c0_136, %c5_137, %c0_138, %c0_139], %177 {strides = array<i32>} : memref<1x47x8x128xf32, #tpu.memory_space<vmem>>, vector<1x1x8x128xf32>,
    %c0_140 = arith.constant 0 : index
    %c20 = arith.constant 20 : index
    %c0_141 = arith.constant 0 : index
    %c0_142 = arith.constant 0 : index
    %178 = vector.load %arg4[%c0_140, %c20, %c0_141, %c0_142] : memref<1x47x8x128xf32, #tpu.memory_space<vmem>>, vector<1x1x8x128xf32>
    %179 = vector.shape_cast %178 : vector<1x1x8x128xf32> to vector<8x128xf32>
    %180 = vector.broadcast %cst_1 : f32 to vector<1x8x128xf32>
    %181 = arith.select %167, %15, %180 : vector<1x8x128xi1>, vector<1x8x128xf32>
    %cst_143 = arith.constant dense<0.000000e+00> : vector<8x128xf32>
    %182 = vector.multi_reduction <add>, %181, %cst_143 [0] : vector<1x8x128xf32> to vector<8x128xf32>
    %183 = arith.addf %179, %182 : vector<8x128xf32>
    %c0_144 = arith.constant 0 : index
    %c20_145 = arith.constant 20 : index
    %c0_146 = arith.constant 0 : index
    %c0_147 = arith.constant 0 : index
    %184 = vector.load %arg4[%c0_144, %c20_145, %c0_146, %c0_147] : memref<1x47x8x128xf32, #tpu.memory_space<vmem>>, vector<1x1x8x128xf32>
    %185 = vector.shape_cast %184 : vector<1x1x8x128xf32> to vector<8x128xf32>
    %186 = vector.shape_cast %183 : vector<8x128xf32> to vector<1x1x8x128xf32>
    tpu.vector_store %arg4[%c0_144, %c20_145, %c0_146, %c0_147], %186 {strides = array<i32>} : memref<1x47x8x128xf32, #tpu.memory_space<vmem>>, vector<1x1x8x128xf32>,
    %c0_148 = arith.constant 0 : index
    %c35 = arith.constant 35 : index
    %c0_149 = arith.constant 0 : index
    %c0_150 = arith.constant 0 : index
    %187 = vector.load %arg4[%c0_148, %c35, %c0_149, %c0_150] : memref<1x47x8x128xf32, #tpu.memory_space<vmem>>, vector<1x1x8x128xf32>
    %188 = vector.shape_cast %187 : vector<1x1x8x128xf32> to vector<8x128xf32>
    %189 = vector.broadcast %cst_1 : f32 to vector<1x8x128xf32>
    %190 = arith.select %167, %14, %189 : vector<1x8x128xi1>, vector<1x8x128xf32>
    %cst_151 = arith.constant dense<0.000000e+00> : vector<8x128xf32>
    %191 = vector.multi_reduction <add>, %190, %cst_151 [0] : vector<1x8x128xf32> to vector<8x128xf32>
    %192 = arith.addf %188, %191 : vector<8x128xf32>
    %c0_152 = arith.constant 0 : index
    %c35_153 = arith.constant 35 : index
    %c0_154 = arith.constant 0 : index
    %c0_155 = arith.constant 0 : index
    %193 = vector.load %arg4[%c0_152, %c35_153, %c0_154, %c0_155] : memref<1x47x8x128xf32, #tpu.memory_space<vmem>>, vector<1x1x8x128xf32>
    %194 = vector.shape_cast %193 : vector<1x1x8x128xf32> to vector<8x128xf32>
    %195 = vector.shape_cast %192 : vector<8x128xf32> to vector<1x1x8x128xf32>
    tpu.vector_store %arg4[%c0_152, %c35_153, %c0_154, %c0_155], %195 {strides = array<i32>} : memref<1x47x8x128xf32, #tpu.memory_space<vmem>>, vector<1x1x8x128xf32>,
    %cst_156 = arith.constant 0.466666669 : f32
    %196 = vector.broadcast %cst_156 : f32 to vector<1x8x128xf32>
    %197 = arith.cmpf ole, %14, %196 : vector<1x8x128xf32>
    %c0_157 = arith.constant 0 : index
    %c6 = arith.constant 6 : index
    %c0_158 = arith.constant 0 : index
    %c0_159 = arith.constant 0 : index
    %198 = vector.load %arg4[%c0_157, %c6, %c0_158, %c0_159] : memref<1x47x8x128xf32, #tpu.memory_space<vmem>>, vector<1x1x8x128xf32>
    %199 = vector.shape_cast %198 : vector<1x1x8x128xf32> to vector<8x128xf32>
    %200 = vector.broadcast %cst : f32 to vector<1x8x128xf32>
    %201 = vector.broadcast %cst_1 : f32 to vector<1x8x128xf32>
    %202 = arith.select %197, %200, %201 : vector<1x8x128xi1>, vector<1x8x128xf32>
    %cst_160 = arith.constant dense<0.000000e+00> : vector<8x128xf32>
    %203 = vector.multi_reduction <add>, %202, %cst_160 [0] : vector<1x8x128xf32> to vector<8x128xf32>
    %204 = arith.addf %199, %203 : vector<8x128xf32>
    %c0_161 = arith.constant 0 : index
    %c6_162 = arith.constant 6 : index
    %c0_163 = arith.constant 0 : index
    %c0_164 = arith.constant 0 : index
    %205 = vector.load %arg4[%c0_161, %c6_162, %c0_163, %c0_164] : memref<1x47x8x128xf32, #tpu.memory_space<vmem>>, vector<1x1x8x128xf32>
    %206 = vector.shape_cast %205 : vector<1x1x8x128xf32> to vector<8x128xf32>
    %207 = vector.shape_cast %204 : vector<8x128xf32> to vector<1x1x8x128xf32>
    tpu.vector_store %arg4[%c0_161, %c6_162, %c0_163, %c0_164], %207 {strides = array<i32>} : memref<1x47x8x128xf32, #tpu.memory_space<vmem>>, vector<1x1x8x128xf32>,
    %c0_165 = arith.constant 0 : index
    %c21 = arith.constant 21 : index
    %c0_166 = arith.constant 0 : index
    %c0_167 = arith.constant 0 : index
    %208 = vector.load %arg4[%c0_165, %c21, %c0_166, %c0_167] : memref<1x47x8x128xf32, #tpu.memory_space<vmem>>, vector<1x1x8x128xf32>
    %209 = vector.shape_cast %208 : vector<1x1x8x128xf32> to vector<8x128xf32>
    %210 = vector.broadcast %cst_1 : f32 to vector<1x8x128xf32>
    %211 = arith.select %197, %15, %210 : vector<1x8x128xi1>, vector<1x8x128xf32>
    %cst_168 = arith.constant dense<0.000000e+00> : vector<8x128xf32>
    %212 = vector.multi_reduction <add>, %211, %cst_168 [0] : vector<1x8x128xf32> to vector<8x128xf32>
    %213 = arith.addf %209, %212 : vector<8x128xf32>
    %c0_169 = arith.constant 0 : index
    %c21_170 = arith.constant 21 : index
    %c0_171 = arith.constant 0 : index
    %c0_172 = arith.constant 0 : index
    %214 = vector.load %arg4[%c0_169, %c21_170, %c0_171, %c0_172] : memref<1x47x8x128xf32, #tpu.memory_space<vmem>>, vector<1x1x8x128xf32>
    %215 = vector.shape_cast %214 : vector<1x1x8x128xf32> to vector<8x128xf32>
    %216 = vector.shape_cast %213 : vector<8x128xf32> to vector<1x1x8x128xf32>
    tpu.vector_store %arg4[%c0_169, %c21_170, %c0_171, %c0_172], %216 {strides = array<i32>} : memref<1x47x8x128xf32, #tpu.memory_space<vmem>>, vector<1x1x8x128xf32>,
    %c0_173 = arith.constant 0 : index
    %c36 = arith.constant 36 : index
    %c0_174 = arith.constant 0 : index
    %c0_175 = arith.constant 0 : index
    %217 = vector.load %arg4[%c0_173, %c36, %c0_174, %c0_175] : memref<1x47x8x128xf32, #tpu.memory_space<vmem>>, vector<1x1x8x128xf32>
    %218 = vector.shape_cast %217 : vector<1x1x8x128xf32> to vector<8x128xf32>
    %219 = vector.broadcast %cst_1 : f32 to vector<1x8x128xf32>
    %220 = arith.select %197, %14, %219 : vector<1x8x128xi1>, vector<1x8x128xf32>
    %cst_176 = arith.constant dense<0.000000e+00> : vector<8x128xf32>
    %221 = vector.multi_reduction <add>, %220, %cst_176 [0] : vector<1x8x128xf32> to vector<8x128xf32>
    %222 = arith.addf %218, %221 : vector<8x128xf32>
    %c0_177 = arith.constant 0 : index
    %c36_178 = arith.constant 36 : index
    %c0_179 = arith.constant 0 : index
    %c0_180 = arith.constant 0 : index
    %223 = vector.load %arg4[%c0_177, %c36_178, %c0_179, %c0_180] : memref<1x47x8x128xf32, #tpu.memory_space<vmem>>, vector<1x1x8x128xf32>
    %224 = vector.shape_cast %223 : vector<1x1x8x128xf32> to vector<8x128xf32>
    %225 = vector.shape_cast %222 : vector<8x128xf32> to vector<1x1x8x128xf32>
    tpu.vector_store %arg4[%c0_177, %c36_178, %c0_179, %c0_180], %225 {strides = array<i32>} : memref<1x47x8x128xf32, #tpu.memory_space<vmem>>, vector<1x1x8x128xf32>,
    %cst_181 = arith.constant 0.533333361 : f32
    %226 = vector.broadcast %cst_181 : f32 to vector<1x8x128xf32>
    %227 = arith.cmpf ole, %14, %226 : vector<1x8x128xf32>
    %c0_182 = arith.constant 0 : index
    %c7 = arith.constant 7 : index
    %c0_183 = arith.constant 0 : index
    %c0_184 = arith.constant 0 : index
    %228 = vector.load %arg4[%c0_182, %c7, %c0_183, %c0_184] : memref<1x47x8x128xf32, #tpu.memory_space<vmem>>, vector<1x1x8x128xf32>
    %229 = vector.shape_cast %228 : vector<1x1x8x128xf32> to vector<8x128xf32>
    %230 = vector.broadcast %cst : f32 to vector<1x8x128xf32>
    %231 = vector.broadcast %cst_1 : f32 to vector<1x8x128xf32>
    %232 = arith.select %227, %230, %231 : vector<1x8x128xi1>, vector<1x8x128xf32>
    %cst_185 = arith.constant dense<0.000000e+00> : vector<8x128xf32>
    %233 = vector.multi_reduction <add>, %232, %cst_185 [0] : vector<1x8x128xf32> to vector<8x128xf32>
    %234 = arith.addf %229, %233 : vector<8x128xf32>
    %c0_186 = arith.constant 0 : index
    %c7_187 = arith.constant 7 : index
    %c0_188 = arith.constant 0 : index
    %c0_189 = arith.constant 0 : index
    %235 = vector.load %arg4[%c0_186, %c7_187, %c0_188, %c0_189] : memref<1x47x8x128xf32, #tpu.memory_space<vmem>>, vector<1x1x8x128xf32>
    %236 = vector.shape_cast %235 : vector<1x1x8x128xf32> to vector<8x128xf32>
    %237 = vector.shape_cast %234 : vector<8x128xf32> to vector<1x1x8x128xf32>
    tpu.vector_store %arg4[%c0_186, %c7_187, %c0_188, %c0_189], %237 {strides = array<i32>} : memref<1x47x8x128xf32, #tpu.memory_space<vmem>>, vector<1x1x8x128xf32>,
    %c0_190 = arith.constant 0 : index
    %c22 = arith.constant 22 : index
    %c0_191 = arith.constant 0 : index
    %c0_192 = arith.constant 0 : index
    %238 = vector.load %arg4[%c0_190, %c22, %c0_191, %c0_192] : memref<1x47x8x128xf32, #tpu.memory_space<vmem>>, vector<1x1x8x128xf32>
    %239 = vector.shape_cast %238 : vector<1x1x8x128xf32> to vector<8x128xf32>
    %240 = vector.broadcast %cst_1 : f32 to vector<1x8x128xf32>
    %241 = arith.select %227, %15, %240 : vector<1x8x128xi1>, vector<1x8x128xf32>
    %cst_193 = arith.constant dense<0.000000e+00> : vector<8x128xf32>
    %242 = vector.multi_reduction <add>, %241, %cst_193 [0] : vector<1x8x128xf32> to vector<8x128xf32>
    %243 = arith.addf %239, %242 : vector<8x128xf32>
    %c0_194 = arith.constant 0 : index
    %c22_195 = arith.constant 22 : index
    %c0_196 = arith.constant 0 : index
    %c0_197 = arith.constant 0 : index
    %244 = vector.load %arg4[%c0_194, %c22_195, %c0_196, %c0_197] : memref<1x47x8x128xf32, #tpu.memory_space<vmem>>, vector<1x1x8x128xf32>
    %245 = vector.shape_cast %244 : vector<1x1x8x128xf32> to vector<8x128xf32>
    %246 = vector.shape_cast %243 : vector<8x128xf32> to vector<1x1x8x128xf32>
    tpu.vector_store %arg4[%c0_194, %c22_195, %c0_196, %c0_197], %246 {strides = array<i32>} : memref<1x47x8x128xf32, #tpu.memory_space<vmem>>, vector<1x1x8x128xf32>,
    %c0_198 = arith.constant 0 : index
    %c37 = arith.constant 37 : index
    %c0_199 = arith.constant 0 : index
    %c0_200 = arith.constant 0 : index
    %247 = vector.load %arg4[%c0_198, %c37, %c0_199, %c0_200] : memref<1x47x8x128xf32, #tpu.memory_space<vmem>>, vector<1x1x8x128xf32>
    %248 = vector.shape_cast %247 : vector<1x1x8x128xf32> to vector<8x128xf32>
    %249 = vector.broadcast %cst_1 : f32 to vector<1x8x128xf32>
    %250 = arith.select %227, %14, %249 : vector<1x8x128xi1>, vector<1x8x128xf32>
    %cst_201 = arith.constant dense<0.000000e+00> : vector<8x128xf32>
    %251 = vector.multi_reduction <add>, %250, %cst_201 [0] : vector<1x8x128xf32> to vector<8x128xf32>
    %252 = arith.addf %248, %251 : vector<8x128xf32>
    %c0_202 = arith.constant 0 : index
    %c37_203 = arith.constant 37 : index
    %c0_204 = arith.constant 0 : index
    %c0_205 = arith.constant 0 : index
    %253 = vector.load %arg4[%c0_202, %c37_203, %c0_204, %c0_205] : memref<1x47x8x128xf32, #tpu.memory_space<vmem>>, vector<1x1x8x128xf32>
    %254 = vector.shape_cast %253 : vector<1x1x8x128xf32> to vector<8x128xf32>
    %255 = vector.shape_cast %252 : vector<8x128xf32> to vector<1x1x8x128xf32>
    tpu.vector_store %arg4[%c0_202, %c37_203, %c0_204, %c0_205], %255 {strides = array<i32>} : memref<1x47x8x128xf32, #tpu.memory_space<vmem>>, vector<1x1x8x128xf32>,
    %cst_206 = arith.constant 6.000000e-01 : f32
    %256 = vector.broadcast %cst_206 : f32 to vector<1x8x128xf32>
    %257 = arith.cmpf ole, %14, %256 : vector<1x8x128xf32>
    %c0_207 = arith.constant 0 : index
    %c8 = arith.constant 8 : index
    %c0_208 = arith.constant 0 : index
    %c0_209 = arith.constant 0 : index
    %258 = vector.load %arg4[%c0_207, %c8, %c0_208, %c0_209] : memref<1x47x8x128xf32, #tpu.memory_space<vmem>>, vector<1x1x8x128xf32>
    %259 = vector.shape_cast %258 : vector<1x1x8x128xf32> to vector<8x128xf32>
    %260 = vector.broadcast %cst : f32 to vector<1x8x128xf32>
    %261 = vector.broadcast %cst_1 : f32 to vector<1x8x128xf32>
    %262 = arith.select %257, %260, %261 : vector<1x8x128xi1>, vector<1x8x128xf32>
    %cst_210 = arith.constant dense<0.000000e+00> : vector<8x128xf32>
    %263 = vector.multi_reduction <add>, %262, %cst_210 [0] : vector<1x8x128xf32> to vector<8x128xf32>
    %264 = arith.addf %259, %263 : vector<8x128xf32>
    %c0_211 = arith.constant 0 : index
    %c8_212 = arith.constant 8 : index
    %c0_213 = arith.constant 0 : index
    %c0_214 = arith.constant 0 : index
    %265 = vector.load %arg4[%c0_211, %c8_212, %c0_213, %c0_214] : memref<1x47x8x128xf32, #tpu.memory_space<vmem>>, vector<1x1x8x128xf32>
    %266 = vector.shape_cast %265 : vector<1x1x8x128xf32> to vector<8x128xf32>
    %267 = vector.shape_cast %264 : vector<8x128xf32> to vector<1x1x8x128xf32>
    tpu.vector_store %arg4[%c0_211, %c8_212, %c0_213, %c0_214], %267 {strides = array<i32>} : memref<1x47x8x128xf32, #tpu.memory_space<vmem>>, vector<1x1x8x128xf32>,
    %c0_215 = arith.constant 0 : index
    %c23 = arith.constant 23 : index
    %c0_216 = arith.constant 0 : index
    %c0_217 = arith.constant 0 : index
    %268 = vector.load %arg4[%c0_215, %c23, %c0_216, %c0_217] : memref<1x47x8x128xf32, #tpu.memory_space<vmem>>, vector<1x1x8x128xf32>
    %269 = vector.shape_cast %268 : vector<1x1x8x128xf32> to vector<8x128xf32>
    %270 = vector.broadcast %cst_1 : f32 to vector<1x8x128xf32>
    %271 = arith.select %257, %15, %270 : vector<1x8x128xi1>, vector<1x8x128xf32>
    %cst_218 = arith.constant dense<0.000000e+00> : vector<8x128xf32>
    %272 = vector.multi_reduction <add>, %271, %cst_218 [0] : vector<1x8x128xf32> to vector<8x128xf32>
    %273 = arith.addf %269, %272 : vector<8x128xf32>
    %c0_219 = arith.constant 0 : index
    %c23_220 = arith.constant 23 : index
    %c0_221 = arith.constant 0 : index
    %c0_222 = arith.constant 0 : index
    %274 = vector.load %arg4[%c0_219, %c23_220, %c0_221, %c0_222] : memref<1x47x8x128xf32, #tpu.memory_space<vmem>>, vector<1x1x8x128xf32>
    %275 = vector.shape_cast %274 : vector<1x1x8x128xf32> to vector<8x128xf32>
    %276 = vector.shape_cast %273 : vector<8x128xf32> to vector<1x1x8x128xf32>
    tpu.vector_store %arg4[%c0_219, %c23_220, %c0_221, %c0_222], %276 {strides = array<i32>} : memref<1x47x8x128xf32, #tpu.memory_space<vmem>>, vector<1x1x8x128xf32>,
    %c0_223 = arith.constant 0 : index
    %c38 = arith.constant 38 : index
    %c0_224 = arith.constant 0 : index
    %c0_225 = arith.constant 0 : index
    %277 = vector.load %arg4[%c0_223, %c38, %c0_224, %c0_225] : memref<1x47x8x128xf32, #tpu.memory_space<vmem>>, vector<1x1x8x128xf32>
    %278 = vector.shape_cast %277 : vector<1x1x8x128xf32> to vector<8x128xf32>
    %279 = vector.broadcast %cst_1 : f32 to vector<1x8x128xf32>
    %280 = arith.select %257, %14, %279 : vector<1x8x128xi1>, vector<1x8x128xf32>
    %cst_226 = arith.constant dense<0.000000e+00> : vector<8x128xf32>
    %281 = vector.multi_reduction <add>, %280, %cst_226 [0] : vector<1x8x128xf32> to vector<8x128xf32>
    %282 = arith.addf %278, %281 : vector<8x128xf32>
    %c0_227 = arith.constant 0 : index
    %c38_228 = arith.constant 38 : index
    %c0_229 = arith.constant 0 : index
    %c0_230 = arith.constant 0 : index
    %283 = vector.load %arg4[%c0_227, %c38_228, %c0_229, %c0_230] : memref<1x47x8x128xf32, #tpu.memory_space<vmem>>, vector<1x1x8x128xf32>
    %284 = vector.shape_cast %283 : vector<1x1x8x128xf32> to vector<8x128xf32>
    %285 = vector.shape_cast %282 : vector<8x128xf32> to vector<1x1x8x128xf32>
    tpu.vector_store %arg4[%c0_227, %c38_228, %c0_229, %c0_230], %285 {strides = array<i32>} : memref<1x47x8x128xf32, #tpu.memory_space<vmem>>, vector<1x1x8x128xf32>,
    %cst_231 = arith.constant 0.666666686 : f32
    %286 = vector.broadcast %cst_231 : f32 to vector<1x8x128xf32>
    %287 = arith.cmpf ole, %14, %286 : vector<1x8x128xf32>
    %c0_232 = arith.constant 0 : index
    %c9 = arith.constant 9 : index
    %c0_233 = arith.constant 0 : index
    %c0_234 = arith.constant 0 : index
    %288 = vector.load %arg4[%c0_232, %c9, %c0_233, %c0_234] : memref<1x47x8x128xf32, #tpu.memory_space<vmem>>, vector<1x1x8x128xf32>
    %289 = vector.shape_cast %288 : vector<1x1x8x128xf32> to vector<8x128xf32>
    %290 = vector.broadcast %cst : f32 to vector<1x8x128xf32>
    %291 = vector.broadcast %cst_1 : f32 to vector<1x8x128xf32>
    %292 = arith.select %287, %290, %291 : vector<1x8x128xi1>, vector<1x8x128xf32>
    %cst_235 = arith.constant dense<0.000000e+00> : vector<8x128xf32>
    %293 = vector.multi_reduction <add>, %292, %cst_235 [0] : vector<1x8x128xf32> to vector<8x128xf32>
    %294 = arith.addf %289, %293 : vector<8x128xf32>
    %c0_236 = arith.constant 0 : index
    %c9_237 = arith.constant 9 : index
    %c0_238 = arith.constant 0 : index
    %c0_239 = arith.constant 0 : index
    %295 = vector.load %arg4[%c0_236, %c9_237, %c0_238, %c0_239] : memref<1x47x8x128xf32, #tpu.memory_space<vmem>>, vector<1x1x8x128xf32>
    %296 = vector.shape_cast %295 : vector<1x1x8x128xf32> to vector<8x128xf32>
    %297 = vector.shape_cast %294 : vector<8x128xf32> to vector<1x1x8x128xf32>
    tpu.vector_store %arg4[%c0_236, %c9_237, %c0_238, %c0_239], %297 {strides = array<i32>} : memref<1x47x8x128xf32, #tpu.memory_space<vmem>>, vector<1x1x8x128xf32>,
    %c0_240 = arith.constant 0 : index
    %c24 = arith.constant 24 : index
    %c0_241 = arith.constant 0 : index
    %c0_242 = arith.constant 0 : index
    %298 = vector.load %arg4[%c0_240, %c24, %c0_241, %c0_242] : memref<1x47x8x128xf32, #tpu.memory_space<vmem>>, vector<1x1x8x128xf32>
    %299 = vector.shape_cast %298 : vector<1x1x8x128xf32> to vector<8x128xf32>
    %300 = vector.broadcast %cst_1 : f32 to vector<1x8x128xf32>
    %301 = arith.select %287, %15, %300 : vector<1x8x128xi1>, vector<1x8x128xf32>
    %cst_243 = arith.constant dense<0.000000e+00> : vector<8x128xf32>
    %302 = vector.multi_reduction <add>, %301, %cst_243 [0] : vector<1x8x128xf32> to vector<8x128xf32>
    %303 = arith.addf %299, %302 : vector<8x128xf32>
    %c0_244 = arith.constant 0 : index
    %c24_245 = arith.constant 24 : index
    %c0_246 = arith.constant 0 : index
    %c0_247 = arith.constant 0 : index
    %304 = vector.load %arg4[%c0_244, %c24_245, %c0_246, %c0_247] : memref<1x47x8x128xf32, #tpu.memory_space<vmem>>, vector<1x1x8x128xf32>
    %305 = vector.shape_cast %304 : vector<1x1x8x128xf32> to vector<8x128xf32>
    %306 = vector.shape_cast %303 : vector<8x128xf32> to vector<1x1x8x128xf32>
    tpu.vector_store %arg4[%c0_244, %c24_245, %c0_246, %c0_247], %306 {strides = array<i32>} : memref<1x47x8x128xf32, #tpu.memory_space<vmem>>, vector<1x1x8x128xf32>,
    %c0_248 = arith.constant 0 : index
    %c39 = arith.constant 39 : index
    %c0_249 = arith.constant 0 : index
    %c0_250 = arith.constant 0 : index
    %307 = vector.load %arg4[%c0_248, %c39, %c0_249, %c0_250] : memref<1x47x8x128xf32, #tpu.memory_space<vmem>>, vector<1x1x8x128xf32>
    %308 = vector.shape_cast %307 : vector<1x1x8x128xf32> to vector<8x128xf32>
    %309 = vector.broadcast %cst_1 : f32 to vector<1x8x128xf32>
    %310 = arith.select %287, %14, %309 : vector<1x8x128xi1>, vector<1x8x128xf32>
    %cst_251 = arith.constant dense<0.000000e+00> : vector<8x128xf32>
    %311 = vector.multi_reduction <add>, %310, %cst_251 [0] : vector<1x8x128xf32> to vector<8x128xf32>
    %312 = arith.addf %308, %311 : vector<8x128xf32>
    %c0_252 = arith.constant 0 : index
    %c39_253 = arith.constant 39 : index
    %c0_254 = arith.constant 0 : index
    %c0_255 = arith.constant 0 : index
    %313 = vector.load %arg4[%c0_252, %c39_253, %c0_254, %c0_255] : memref<1x47x8x128xf32, #tpu.memory_space<vmem>>, vector<1x1x8x128xf32>
    %314 = vector.shape_cast %313 : vector<1x1x8x128xf32> to vector<8x128xf32>
    %315 = vector.shape_cast %312 : vector<8x128xf32> to vector<1x1x8x128xf32>
    tpu.vector_store %arg4[%c0_252, %c39_253, %c0_254, %c0_255], %315 {strides = array<i32>} : memref<1x47x8x128xf32, #tpu.memory_space<vmem>>, vector<1x1x8x128xf32>,
    %cst_256 = arith.constant 0.733333349 : f32
    %316 = vector.broadcast %cst_256 : f32 to vector<1x8x128xf32>
    %317 = arith.cmpf ole, %14, %316 : vector<1x8x128xf32>
    %c0_257 = arith.constant 0 : index
    %c10 = arith.constant 10 : index
    %c0_258 = arith.constant 0 : index
    %c0_259 = arith.constant 0 : index
    %318 = vector.load %arg4[%c0_257, %c10, %c0_258, %c0_259] : memref<1x47x8x128xf32, #tpu.memory_space<vmem>>, vector<1x1x8x128xf32>
    %319 = vector.shape_cast %318 : vector<1x1x8x128xf32> to vector<8x128xf32>
    %320 = vector.broadcast %cst : f32 to vector<1x8x128xf32>
    %321 = vector.broadcast %cst_1 : f32 to vector<1x8x128xf32>
    %322 = arith.select %317, %320, %321 : vector<1x8x128xi1>, vector<1x8x128xf32>
    %cst_260 = arith.constant dense<0.000000e+00> : vector<8x128xf32>
    %323 = vector.multi_reduction <add>, %322, %cst_260 [0] : vector<1x8x128xf32> to vector<8x128xf32>
    %324 = arith.addf %319, %323 : vector<8x128xf32>
    %c0_261 = arith.constant 0 : index
    %c10_262 = arith.constant 10 : index
    %c0_263 = arith.constant 0 : index
    %c0_264 = arith.constant 0 : index
    %325 = vector.load %arg4[%c0_261, %c10_262, %c0_263, %c0_264] : memref<1x47x8x128xf32, #tpu.memory_space<vmem>>, vector<1x1x8x128xf32>
    %326 = vector.shape_cast %325 : vector<1x1x8x128xf32> to vector<8x128xf32>
    %327 = vector.shape_cast %324 : vector<8x128xf32> to vector<1x1x8x128xf32>
    tpu.vector_store %arg4[%c0_261, %c10_262, %c0_263, %c0_264], %327 {strides = array<i32>} : memref<1x47x8x128xf32, #tpu.memory_space<vmem>>, vector<1x1x8x128xf32>,
    %c0_265 = arith.constant 0 : index
    %c25 = arith.constant 25 : index
    %c0_266 = arith.constant 0 : index
    %c0_267 = arith.constant 0 : index
    %328 = vector.load %arg4[%c0_265, %c25, %c0_266, %c0_267] : memref<1x47x8x128xf32, #tpu.memory_space<vmem>>, vector<1x1x8x128xf32>
    %329 = vector.shape_cast %328 : vector<1x1x8x128xf32> to vector<8x128xf32>
    %330 = vector.broadcast %cst_1 : f32 to vector<1x8x128xf32>
    %331 = arith.select %317, %15, %330 : vector<1x8x128xi1>, vector<1x8x128xf32>
    %cst_268 = arith.constant dense<0.000000e+00> : vector<8x128xf32>
    %332 = vector.multi_reduction <add>, %331, %cst_268 [0] : vector<1x8x128xf32> to vector<8x128xf32>
    %333 = arith.addf %329, %332 : vector<8x128xf32>
    %c0_269 = arith.constant 0 : index
    %c25_270 = arith.constant 25 : index
    %c0_271 = arith.constant 0 : index
    %c0_272 = arith.constant 0 : index
    %334 = vector.load %arg4[%c0_269, %c25_270, %c0_271, %c0_272] : memref<1x47x8x128xf32, #tpu.memory_space<vmem>>, vector<1x1x8x128xf32>
    %335 = vector.shape_cast %334 : vector<1x1x8x128xf32> to vector<8x128xf32>
    %336 = vector.shape_cast %333 : vector<8x128xf32> to vector<1x1x8x128xf32>
    tpu.vector_store %arg4[%c0_269, %c25_270, %c0_271, %c0_272], %336 {strides = array<i32>} : memref<1x47x8x128xf32, #tpu.memory_space<vmem>>, vector<1x1x8x128xf32>,
    %c0_273 = arith.constant 0 : index
    %c40 = arith.constant 40 : index
    %c0_274 = arith.constant 0 : index
    %c0_275 = arith.constant 0 : index
    %337 = vector.load %arg4[%c0_273, %c40, %c0_274, %c0_275] : memref<1x47x8x128xf32, #tpu.memory_space<vmem>>, vector<1x1x8x128xf32>
    %338 = vector.shape_cast %337 : vector<1x1x8x128xf32> to vector<8x128xf32>
    %339 = vector.broadcast %cst_1 : f32 to vector<1x8x128xf32>
    %340 = arith.select %317, %14, %339 : vector<1x8x128xi1>, vector<1x8x128xf32>
    %cst_276 = arith.constant dense<0.000000e+00> : vector<8x128xf32>
    %341 = vector.multi_reduction <add>, %340, %cst_276 [0] : vector<1x8x128xf32> to vector<8x128xf32>
    %342 = arith.addf %338, %341 : vector<8x128xf32>
    %c0_277 = arith.constant 0 : index
    %c40_278 = arith.constant 40 : index
    %c0_279 = arith.constant 0 : index
    %c0_280 = arith.constant 0 : index
    %343 = vector.load %arg4[%c0_277, %c40_278, %c0_279, %c0_280] : memref<1x47x8x128xf32, #tpu.memory_space<vmem>>, vector<1x1x8x128xf32>
    %344 = vector.shape_cast %343 : vector<1x1x8x128xf32> to vector<8x128xf32>
    %345 = vector.shape_cast %342 : vector<8x128xf32> to vector<1x1x8x128xf32>
    tpu.vector_store %arg4[%c0_277, %c40_278, %c0_279, %c0_280], %345 {strides = array<i32>} : memref<1x47x8x128xf32, #tpu.memory_space<vmem>>, vector<1x1x8x128xf32>,
    %cst_281 = arith.constant 8.000000e-01 : f32
    %346 = vector.broadcast %cst_281 : f32 to vector<1x8x128xf32>
    %347 = arith.cmpf ole, %14, %346 : vector<1x8x128xf32>
    %c0_282 = arith.constant 0 : index
    %c11 = arith.constant 11 : index
    %c0_283 = arith.constant 0 : index
    %c0_284 = arith.constant 0 : index
    %348 = vector.load %arg4[%c0_282, %c11, %c0_283, %c0_284] : memref<1x47x8x128xf32, #tpu.memory_space<vmem>>, vector<1x1x8x128xf32>
    %349 = vector.shape_cast %348 : vector<1x1x8x128xf32> to vector<8x128xf32>
    %350 = vector.broadcast %cst : f32 to vector<1x8x128xf32>
    %351 = vector.broadcast %cst_1 : f32 to vector<1x8x128xf32>
    %352 = arith.select %347, %350, %351 : vector<1x8x128xi1>, vector<1x8x128xf32>
    %cst_285 = arith.constant dense<0.000000e+00> : vector<8x128xf32>
    %353 = vector.multi_reduction <add>, %352, %cst_285 [0] : vector<1x8x128xf32> to vector<8x128xf32>
    %354 = arith.addf %349, %353 : vector<8x128xf32>
    %c0_286 = arith.constant 0 : index
    %c11_287 = arith.constant 11 : index
    %c0_288 = arith.constant 0 : index
    %c0_289 = arith.constant 0 : index
    %355 = vector.load %arg4[%c0_286, %c11_287, %c0_288, %c0_289] : memref<1x47x8x128xf32, #tpu.memory_space<vmem>>, vector<1x1x8x128xf32>
    %356 = vector.shape_cast %355 : vector<1x1x8x128xf32> to vector<8x128xf32>
    %357 = vector.shape_cast %354 : vector<8x128xf32> to vector<1x1x8x128xf32>
    tpu.vector_store %arg4[%c0_286, %c11_287, %c0_288, %c0_289], %357 {strides = array<i32>} : memref<1x47x8x128xf32, #tpu.memory_space<vmem>>, vector<1x1x8x128xf32>,
    %c0_290 = arith.constant 0 : index
    %c26 = arith.constant 26 : index
    %c0_291 = arith.constant 0 : index
    %c0_292 = arith.constant 0 : index
    %358 = vector.load %arg4[%c0_290, %c26, %c0_291, %c0_292] : memref<1x47x8x128xf32, #tpu.memory_space<vmem>>, vector<1x1x8x128xf32>
    %359 = vector.shape_cast %358 : vector<1x1x8x128xf32> to vector<8x128xf32>
    %360 = vector.broadcast %cst_1 : f32 to vector<1x8x128xf32>
    %361 = arith.select %347, %15, %360 : vector<1x8x128xi1>, vector<1x8x128xf32>
    %cst_293 = arith.constant dense<0.000000e+00> : vector<8x128xf32>
    %362 = vector.multi_reduction <add>, %361, %cst_293 [0] : vector<1x8x128xf32> to vector<8x128xf32>
    %363 = arith.addf %359, %362 : vector<8x128xf32>
    %c0_294 = arith.constant 0 : index
    %c26_295 = arith.constant 26 : index
    %c0_296 = arith.constant 0 : index
    %c0_297 = arith.constant 0 : index
    %364 = vector.load %arg4[%c0_294, %c26_295, %c0_296, %c0_297] : memref<1x47x8x128xf32, #tpu.memory_space<vmem>>, vector<1x1x8x128xf32>
    %365 = vector.shape_cast %364 : vector<1x1x8x128xf32> to vector<8x128xf32>
    %366 = vector.shape_cast %363 : vector<8x128xf32> to vector<1x1x8x128xf32>
    tpu.vector_store %arg4[%c0_294, %c26_295, %c0_296, %c0_297], %366 {strides = array<i32>} : memref<1x47x8x128xf32, #tpu.memory_space<vmem>>, vector<1x1x8x128xf32>,
    %c0_298 = arith.constant 0 : index
    %c41 = arith.constant 41 : index
    %c0_299 = arith.constant 0 : index
    %c0_300 = arith.constant 0 : index
    %367 = vector.load %arg4[%c0_298, %c41, %c0_299, %c0_300] : memref<1x47x8x128xf32, #tpu.memory_space<vmem>>, vector<1x1x8x128xf32>
    %368 = vector.shape_cast %367 : vector<1x1x8x128xf32> to vector<8x128xf32>
    %369 = vector.broadcast %cst_1 : f32 to vector<1x8x128xf32>
    %370 = arith.select %347, %14, %369 : vector<1x8x128xi1>, vector<1x8x128xf32>
    %cst_301 = arith.constant dense<0.000000e+00> : vector<8x128xf32>
    %371 = vector.multi_reduction <add>, %370, %cst_301 [0] : vector<1x8x128xf32> to vector<8x128xf32>
    %372 = arith.addf %368, %371 : vector<8x128xf32>
    %c0_302 = arith.constant 0 : index
    %c41_303 = arith.constant 41 : index
    %c0_304 = arith.constant 0 : index
    %c0_305 = arith.constant 0 : index
    %373 = vector.load %arg4[%c0_302, %c41_303, %c0_304, %c0_305] : memref<1x47x8x128xf32, #tpu.memory_space<vmem>>, vector<1x1x8x128xf32>
    %374 = vector.shape_cast %373 : vector<1x1x8x128xf32> to vector<8x128xf32>
    %375 = vector.shape_cast %372 : vector<8x128xf32> to vector<1x1x8x128xf32>
    tpu.vector_store %arg4[%c0_302, %c41_303, %c0_304, %c0_305], %375 {strides = array<i32>} : memref<1x47x8x128xf32, #tpu.memory_space<vmem>>, vector<1x1x8x128xf32>,
    %cst_306 = arith.constant 0.866666674 : f32
    %376 = vector.broadcast %cst_306 : f32 to vector<1x8x128xf32>
    %377 = arith.cmpf ole, %14, %376 : vector<1x8x128xf32>
    %c0_307 = arith.constant 0 : index
    %c12 = arith.constant 12 : index
    %c0_308 = arith.constant 0 : index
    %c0_309 = arith.constant 0 : index
    %378 = vector.load %arg4[%c0_307, %c12, %c0_308, %c0_309] : memref<1x47x8x128xf32, #tpu.memory_space<vmem>>, vector<1x1x8x128xf32>
    %379 = vector.shape_cast %378 : vector<1x1x8x128xf32> to vector<8x128xf32>
    %380 = vector.broadcast %cst : f32 to vector<1x8x128xf32>
    %381 = vector.broadcast %cst_1 : f32 to vector<1x8x128xf32>
    %382 = arith.select %377, %380, %381 : vector<1x8x128xi1>, vector<1x8x128xf32>
    %cst_310 = arith.constant dense<0.000000e+00> : vector<8x128xf32>
    %383 = vector.multi_reduction <add>, %382, %cst_310 [0] : vector<1x8x128xf32> to vector<8x128xf32>
    %384 = arith.addf %379, %383 : vector<8x128xf32>
    %c0_311 = arith.constant 0 : index
    %c12_312 = arith.constant 12 : index
    %c0_313 = arith.constant 0 : index
    %c0_314 = arith.constant 0 : index
    %385 = vector.load %arg4[%c0_311, %c12_312, %c0_313, %c0_314] : memref<1x47x8x128xf32, #tpu.memory_space<vmem>>, vector<1x1x8x128xf32>
    %386 = vector.shape_cast %385 : vector<1x1x8x128xf32> to vector<8x128xf32>
    %387 = vector.shape_cast %384 : vector<8x128xf32> to vector<1x1x8x128xf32>
    tpu.vector_store %arg4[%c0_311, %c12_312, %c0_313, %c0_314], %387 {strides = array<i32>} : memref<1x47x8x128xf32, #tpu.memory_space<vmem>>, vector<1x1x8x128xf32>,
    %c0_315 = arith.constant 0 : index
    %c27 = arith.constant 27 : index
    %c0_316 = arith.constant 0 : index
    %c0_317 = arith.constant 0 : index
    %388 = vector.load %arg4[%c0_315, %c27, %c0_316, %c0_317] : memref<1x47x8x128xf32, #tpu.memory_space<vmem>>, vector<1x1x8x128xf32>
    %389 = vector.shape_cast %388 : vector<1x1x8x128xf32> to vector<8x128xf32>
    %390 = vector.broadcast %cst_1 : f32 to vector<1x8x128xf32>
    %391 = arith.select %377, %15, %390 : vector<1x8x128xi1>, vector<1x8x128xf32>
    %cst_318 = arith.constant dense<0.000000e+00> : vector<8x128xf32>
    %392 = vector.multi_reduction <add>, %391, %cst_318 [0] : vector<1x8x128xf32> to vector<8x128xf32>
    %393 = arith.addf %389, %392 : vector<8x128xf32>
    %c0_319 = arith.constant 0 : index
    %c27_320 = arith.constant 27 : index
    %c0_321 = arith.constant 0 : index
    %c0_322 = arith.constant 0 : index
    %394 = vector.load %arg4[%c0_319, %c27_320, %c0_321, %c0_322] : memref<1x47x8x128xf32, #tpu.memory_space<vmem>>, vector<1x1x8x128xf32>
    %395 = vector.shape_cast %394 : vector<1x1x8x128xf32> to vector<8x128xf32>
    %396 = vector.shape_cast %393 : vector<8x128xf32> to vector<1x1x8x128xf32>
    tpu.vector_store %arg4[%c0_319, %c27_320, %c0_321, %c0_322], %396 {strides = array<i32>} : memref<1x47x8x128xf32, #tpu.memory_space<vmem>>, vector<1x1x8x128xf32>,
    %c0_323 = arith.constant 0 : index
    %c42 = arith.constant 42 : index
    %c0_324 = arith.constant 0 : index
    %c0_325 = arith.constant 0 : index
    %397 = vector.load %arg4[%c0_323, %c42, %c0_324, %c0_325] : memref<1x47x8x128xf32, #tpu.memory_space<vmem>>, vector<1x1x8x128xf32>
    %398 = vector.shape_cast %397 : vector<1x1x8x128xf32> to vector<8x128xf32>
    %399 = vector.broadcast %cst_1 : f32 to vector<1x8x128xf32>
    %400 = arith.select %377, %14, %399 : vector<1x8x128xi1>, vector<1x8x128xf32>
    %cst_326 = arith.constant dense<0.000000e+00> : vector<8x128xf32>
    %401 = vector.multi_reduction <add>, %400, %cst_326 [0] : vector<1x8x128xf32> to vector<8x128xf32>
    %402 = arith.addf %398, %401 : vector<8x128xf32>
    %c0_327 = arith.constant 0 : index
    %c42_328 = arith.constant 42 : index
    %c0_329 = arith.constant 0 : index
    %c0_330 = arith.constant 0 : index
    %403 = vector.load %arg4[%c0_327, %c42_328, %c0_329, %c0_330] : memref<1x47x8x128xf32, #tpu.memory_space<vmem>>, vector<1x1x8x128xf32>
    %404 = vector.shape_cast %403 : vector<1x1x8x128xf32> to vector<8x128xf32>
    %405 = vector.shape_cast %402 : vector<8x128xf32> to vector<1x1x8x128xf32>
    tpu.vector_store %arg4[%c0_327, %c42_328, %c0_329, %c0_330], %405 {strides = array<i32>} : memref<1x47x8x128xf32, #tpu.memory_space<vmem>>, vector<1x1x8x128xf32>,
    %cst_331 = arith.constant 0.933333337 : f32
    %406 = vector.broadcast %cst_331 : f32 to vector<1x8x128xf32>
    %407 = arith.cmpf ole, %14, %406 : vector<1x8x128xf32>
    %c0_332 = arith.constant 0 : index
    %c13 = arith.constant 13 : index
    %c0_333 = arith.constant 0 : index
    %c0_334 = arith.constant 0 : index
    %408 = vector.load %arg4[%c0_332, %c13, %c0_333, %c0_334] : memref<1x47x8x128xf32, #tpu.memory_space<vmem>>, vector<1x1x8x128xf32>
    %409 = vector.shape_cast %408 : vector<1x1x8x128xf32> to vector<8x128xf32>
    %410 = vector.broadcast %cst : f32 to vector<1x8x128xf32>
    %411 = vector.broadcast %cst_1 : f32 to vector<1x8x128xf32>
    %412 = arith.select %407, %410, %411 : vector<1x8x128xi1>, vector<1x8x128xf32>
    %cst_335 = arith.constant dense<0.000000e+00> : vector<8x128xf32>
    %413 = vector.multi_reduction <add>, %412, %cst_335 [0] : vector<1x8x128xf32> to vector<8x128xf32>
    %414 = arith.addf %409, %413 : vector<8x128xf32>
    %c0_336 = arith.constant 0 : index
    %c13_337 = arith.constant 13 : index
    %c0_338 = arith.constant 0 : index
    %c0_339 = arith.constant 0 : index
    %415 = vector.load %arg4[%c0_336, %c13_337, %c0_338, %c0_339] : memref<1x47x8x128xf32, #tpu.memory_space<vmem>>, vector<1x1x8x128xf32>
    %416 = vector.shape_cast %415 : vector<1x1x8x128xf32> to vector<8x128xf32>
    %417 = vector.shape_cast %414 : vector<8x128xf32> to vector<1x1x8x128xf32>
    tpu.vector_store %arg4[%c0_336, %c13_337, %c0_338, %c0_339], %417 {strides = array<i32>} : memref<1x47x8x128xf32, #tpu.memory_space<vmem>>, vector<1x1x8x128xf32>,
    %c0_340 = arith.constant 0 : index
    %c28 = arith.constant 28 : index
    %c0_341 = arith.constant 0 : index
    %c0_342 = arith.constant 0 : index
    %418 = vector.load %arg4[%c0_340, %c28, %c0_341, %c0_342] : memref<1x47x8x128xf32, #tpu.memory_space<vmem>>, vector<1x1x8x128xf32>
    %419 = vector.shape_cast %418 : vector<1x1x8x128xf32> to vector<8x128xf32>
    %420 = vector.broadcast %cst_1 : f32 to vector<1x8x128xf32>
    %421 = arith.select %407, %15, %420 : vector<1x8x128xi1>, vector<1x8x128xf32>
    %cst_343 = arith.constant dense<0.000000e+00> : vector<8x128xf32>
    %422 = vector.multi_reduction <add>, %421, %cst_343 [0] : vector<1x8x128xf32> to vector<8x128xf32>
    %423 = arith.addf %419, %422 : vector<8x128xf32>
    %c0_344 = arith.constant 0 : index
    %c28_345 = arith.constant 28 : index
    %c0_346 = arith.constant 0 : index
    %c0_347 = arith.constant 0 : index
    %424 = vector.load %arg4[%c0_344, %c28_345, %c0_346, %c0_347] : memref<1x47x8x128xf32, #tpu.memory_space<vmem>>, vector<1x1x8x128xf32>
    %425 = vector.shape_cast %424 : vector<1x1x8x128xf32> to vector<8x128xf32>
    %426 = vector.shape_cast %423 : vector<8x128xf32> to vector<1x1x8x128xf32>
    tpu.vector_store %arg4[%c0_344, %c28_345, %c0_346, %c0_347], %426 {strides = array<i32>} : memref<1x47x8x128xf32, #tpu.memory_space<vmem>>, vector<1x1x8x128xf32>,
    %c0_348 = arith.constant 0 : index
    %c43 = arith.constant 43 : index
    %c0_349 = arith.constant 0 : index
    %c0_350 = arith.constant 0 : index
    %427 = vector.load %arg4[%c0_348, %c43, %c0_349, %c0_350] : memref<1x47x8x128xf32, #tpu.memory_space<vmem>>, vector<1x1x8x128xf32>
    %428 = vector.shape_cast %427 : vector<1x1x8x128xf32> to vector<8x128xf32>
    %429 = vector.broadcast %cst_1 : f32 to vector<1x8x128xf32>
    %430 = arith.select %407, %14, %429 : vector<1x8x128xi1>, vector<1x8x128xf32>
    %cst_351 = arith.constant dense<0.000000e+00> : vector<8x128xf32>
    %431 = vector.multi_reduction <add>, %430, %cst_351 [0] : vector<1x8x128xf32> to vector<8x128xf32>
    %432 = arith.addf %428, %431 : vector<8x128xf32>
    %c0_352 = arith.constant 0 : index
    %c43_353 = arith.constant 43 : index
    %c0_354 = arith.constant 0 : index
    %c0_355 = arith.constant 0 : index
    %433 = vector.load %arg4[%c0_352, %c43_353, %c0_354, %c0_355] : memref<1x47x8x128xf32, #tpu.memory_space<vmem>>, vector<1x1x8x128xf32>
    %434 = vector.shape_cast %433 : vector<1x1x8x128xf32> to vector<8x128xf32>
    %435 = vector.shape_cast %432 : vector<8x128xf32> to vector<1x1x8x128xf32>
    tpu.vector_store %arg4[%c0_352, %c43_353, %c0_354, %c0_355], %435 {strides = array<i32>} : memref<1x47x8x128xf32, #tpu.memory_space<vmem>>, vector<1x1x8x128xf32>,
    %c0_356 = arith.constant 0 : index
    %c14 = arith.constant 14 : index
    %c0_357 = arith.constant 0 : index
    %c0_358 = arith.constant 0 : index
    %436 = vector.load %arg4[%c0_356, %c14, %c0_357, %c0_358] : memref<1x47x8x128xf32, #tpu.memory_space<vmem>>, vector<1x1x8x128xf32>
    %437 = vector.shape_cast %436 : vector<1x1x8x128xf32> to vector<8x128xf32>
    %cst_359 = arith.constant 1.000000e+00 : f32
    %438 = vector.broadcast %cst_359 : f32 to vector<8x128xf32>
    %439 = arith.addf %437, %438 : vector<8x128xf32>
    %c0_360 = arith.constant 0 : index
    %c14_361 = arith.constant 14 : index
    %c0_362 = arith.constant 0 : index
    %c0_363 = arith.constant 0 : index
    %440 = vector.load %arg4[%c0_360, %c14_361, %c0_362, %c0_363] : memref<1x47x8x128xf32, #tpu.memory_space<vmem>>, vector<1x1x8x128xf32>
    %441 = vector.shape_cast %440 : vector<1x1x8x128xf32> to vector<8x128xf32>
    %442 = vector.shape_cast %439 : vector<8x128xf32> to vector<1x1x8x128xf32>
    tpu.vector_store %arg4[%c0_360, %c14_361, %c0_362, %c0_363], %442 {strides = array<i32>} : memref<1x47x8x128xf32, #tpu.memory_space<vmem>>, vector<1x1x8x128xf32>,
    %c0_364 = arith.constant 0 : index
    %c29 = arith.constant 29 : index
    %c0_365 = arith.constant 0 : index
    %c0_366 = arith.constant 0 : index
    %443 = vector.load %arg4[%c0_364, %c29, %c0_365, %c0_366] : memref<1x47x8x128xf32, #tpu.memory_space<vmem>>, vector<1x1x8x128xf32>
    %444 = vector.shape_cast %443 : vector<1x1x8x128xf32> to vector<8x128xf32>
    %cst_367 = arith.constant dense<0.000000e+00> : vector<8x128xf32>
    %445 = vector.multi_reduction <add>, %15, %cst_367 [0] : vector<1x8x128xf32> to vector<8x128xf32>
    %446 = arith.addf %444, %445 : vector<8x128xf32>
    %c0_368 = arith.constant 0 : index
    %c29_369 = arith.constant 29 : index
    %c0_370 = arith.constant 0 : index
    %c0_371 = arith.constant 0 : index
    %447 = vector.load %arg4[%c0_368, %c29_369, %c0_370, %c0_371] : memref<1x47x8x128xf32, #tpu.memory_space<vmem>>, vector<1x1x8x128xf32>
    %448 = vector.shape_cast %447 : vector<1x1x8x128xf32> to vector<8x128xf32>
    %449 = vector.shape_cast %446 : vector<8x128xf32> to vector<1x1x8x128xf32>
    tpu.vector_store %arg4[%c0_368, %c29_369, %c0_370, %c0_371], %449 {strides = array<i32>} : memref<1x47x8x128xf32, #tpu.memory_space<vmem>>, vector<1x1x8x128xf32>,
    %c0_372 = arith.constant 0 : index
    %c44 = arith.constant 44 : index
    %c0_373 = arith.constant 0 : index
    %c0_374 = arith.constant 0 : index
    %450 = vector.load %arg4[%c0_372, %c44, %c0_373, %c0_374] : memref<1x47x8x128xf32, #tpu.memory_space<vmem>>, vector<1x1x8x128xf32>
    %451 = vector.shape_cast %450 : vector<1x1x8x128xf32> to vector<8x128xf32>
    %cst_375 = arith.constant dense<0.000000e+00> : vector<8x128xf32>
    %452 = vector.multi_reduction <add>, %14, %cst_375 [0] : vector<1x8x128xf32> to vector<8x128xf32>
    %453 = arith.addf %451, %452 : vector<8x128xf32>
    %c0_376 = arith.constant 0 : index
    %c44_377 = arith.constant 44 : index
    %c0_378 = arith.constant 0 : index
    %c0_379 = arith.constant 0 : index
    %454 = vector.load %arg4[%c0_376, %c44_377, %c0_378, %c0_379] : memref<1x47x8x128xf32, #tpu.memory_space<vmem>>, vector<1x1x8x128xf32>
    %455 = vector.shape_cast %454 : vector<1x1x8x128xf32> to vector<8x128xf32>
    %456 = vector.shape_cast %453 : vector<8x128xf32> to vector<1x1x8x128xf32>
    tpu.vector_store %arg4[%c0_376, %c44_377, %c0_378, %c0_379], %456 {strides = array<i32>} : memref<1x47x8x128xf32, #tpu.memory_space<vmem>>, vector<1x1x8x128xf32>,
    %457 = vector.broadcast %cst_1 : f32 to vector<1x8x128xf32>
    %458 = arith.cmpf ole, %14, %457 : vector<1x8x128xf32>
    %c0_380 = arith.constant 0 : index
    %c45 = arith.constant 45 : index
    %c0_381 = arith.constant 0 : index
    %c0_382 = arith.constant 0 : index
    %459 = vector.load %arg4[%c0_380, %c45, %c0_381, %c0_382] : memref<1x47x8x128xf32, #tpu.memory_space<vmem>>, vector<1x1x8x128xf32>
    %460 = vector.shape_cast %459 : vector<1x1x8x128xf32> to vector<8x128xf32>
    %461 = vector.broadcast %cst : f32 to vector<1x8x128xf32>
    %462 = vector.broadcast %cst_1 : f32 to vector<1x8x128xf32>
    %463 = arith.select %458, %461, %462 : vector<1x8x128xi1>, vector<1x8x128xf32>
    %cst_383 = arith.constant dense<0.000000e+00> : vector<8x128xf32>
    %464 = vector.multi_reduction <add>, %463, %cst_383 [0] : vector<1x8x128xf32> to vector<8x128xf32>
    %465 = arith.addf %460, %464 : vector<8x128xf32>
    %c0_384 = arith.constant 0 : index
    %c45_385 = arith.constant 45 : index
    %c0_386 = arith.constant 0 : index
    %c0_387 = arith.constant 0 : index
    %466 = vector.load %arg4[%c0_384, %c45_385, %c0_386, %c0_387] : memref<1x47x8x128xf32, #tpu.memory_space<vmem>>, vector<1x1x8x128xf32>
    %467 = vector.shape_cast %466 : vector<1x1x8x128xf32> to vector<8x128xf32>
    %468 = vector.shape_cast %465 : vector<8x128xf32> to vector<1x1x8x128xf32>
    tpu.vector_store %arg4[%c0_384, %c45_385, %c0_386, %c0_387], %468 {strides = array<i32>} : memref<1x47x8x128xf32, #tpu.memory_space<vmem>>, vector<1x1x8x128xf32>,
    %c0_388 = arith.constant 0 : index
    %c46 = arith.constant 46 : index
    %c0_389 = arith.constant 0 : index
    %c0_390 = arith.constant 0 : index
    %469 = vector.load %arg4[%c0_388, %c46, %c0_389, %c0_390] : memref<1x47x8x128xf32, #tpu.memory_space<vmem>>, vector<1x1x8x128xf32>
    %470 = vector.shape_cast %469 : vector<1x1x8x128xf32> to vector<8x128xf32>
    %471 = vector.broadcast %cst_1 : f32 to vector<1x8x128xf32>
    %472 = arith.select %458, %15, %471 : vector<1x8x128xi1>, vector<1x8x128xf32>
    %cst_391 = arith.constant dense<0.000000e+00> : vector<8x128xf32>
    %473 = vector.multi_reduction <add>, %472, %cst_391 [0] : vector<1x8x128xf32> to vector<8x128xf32>
    %474 = arith.addf %470, %473 : vector<8x128xf32>
    %c0_392 = arith.constant 0 : index
    %c46_393 = arith.constant 46 : index
    %c0_394 = arith.constant 0 : index
    %c0_395 = arith.constant 0 : index
    %475 = vector.load %arg4[%c0_392, %c46_393, %c0_394, %c0_395] : memref<1x47x8x128xf32, #tpu.memory_space<vmem>>, vector<1x1x8x128xf32>
    %476 = vector.shape_cast %475 : vector<1x1x8x128xf32> to vector<8x128xf32>
    %477 = vector.shape_cast %474 : vector<8x128xf32> to vector<1x1x8x128xf32>
    tpu.vector_store %arg4[%c0_392, %c46_393, %c0_394, %c0_395], %477 {strides = array<i32>} : memref<1x47x8x128xf32, #tpu.memory_space<vmem>>, vector<1x1x8x128xf32>,
    %c1_i32 = arith.constant 1 : i32
    return
  }
  func.func @transform_0(%arg0: i32, %arg1: i32) -> (i32, i32) {
    %c1_i32 = arith.constant 1 : i32
    %0 = arith.muli %arg0, %c1_i32 : i32
    %1 = arith.addi %0, %arg1 : i32
    %c0_i32 = arith.constant 0 : i32
    %c0_i32_0 = arith.constant 0 : i32
    return %1, %c0_i32 : i32, i32
  }
  func.func @transform_1(%arg0: i32, %arg1: i32) -> (i32, i32) {
    %c1_i32 = arith.constant 1 : i32
    %0 = arith.muli %arg0, %c1_i32 : i32
    %1 = arith.addi %0, %arg1 : i32
    %c0_i32 = arith.constant 0 : i32
    %c0_i32_0 = arith.constant 0 : i32
    return %1, %c0_i32 : i32, i32
  }
  func.func @transform_2(%arg0: i32, %arg1: i32) -> (i32, i32, i32, i32) {
    %c0_i32 = arith.constant 0 : i32
    %c0_i32_0 = arith.constant 0 : i32
    %c0_i32_1 = arith.constant 0 : i32
    %c0_i32_2 = arith.constant 0 : i32
    return %arg0, %c0_i32, %c0_i32_0, %c0_i32_1 : i32, i32, i32, i32
  }
}

</mosaic_0001>

<bundles_post_ra>
// kernel: tpu_custom_call.1
= control target key start
LH: loop header
LB: loop body
LE: loop exit
PB: predicated region body
PF: predicated region fallthrough
CT: control target
= control target key end

     0   :  { %7 = vsyncpa [#allocation3], 0  ;;  %s1382_s0 = inlined_call_operand.hbm [shape: f32[16,128], index: 0, kind: input, shape index: {}]   ;;  %s1383_s1 = inlined_call_operand.hbm [shape: f32[16,128], index: 1, kind: input, shape index: {}]   ;;  %s1384_s2 = inlined_call_operand.hbm [shape: f32[2,47,8,128], index: 2, kind: output, shape index: {}]  }
   0x1   :  { %9 = vsyncpa [#allocation3 + $0x1], 0 }
   0x2   :  { %10 = vsyncpa [#allocation6], 0 }
   0x3   :  { %12 = vsyncpa [#allocation6 + $0x1], 0 }
   0x4   :  { %13 = vsyncpa [#allocation4], 0 }
   0x5   :  { %15 = vsyncpa [#allocation4 + $0x1], 0  ;;  %s1040_s9 = smov 0   ;;  %s1042_s10 = smov 0  }
   0x6   :  { %s1044_s11 = smov 0   ;;  %s1046_s12 = smov 0  }
   0x7   :  { %s1048_s13 = smov 0   ;;  %s1050_s14 = smov 0  }
   0x8 LB: > { %s687_s15 = sadd.s32 4294967295, %s1016_s14   ;;  %s688_s16 = sadd.s32 4294967294, %s1016_s14   ;;  %s1016_s14 = sphi %s1050_s14, %s21_s14   ;;  %s1012_s13 = sphi %s1048_s13, %s1404_s13   ;;  %s1008_s12 = sphi %s1046_s12, %s1403_s12   ;;  %s1004_s11 = sphi %s1044_s11, %s1402_s11   ;;  %s1000_s10 = sphi %s1042_s10, %s1401_s10   ;;  %s996_s9 = sphi %s1040_s9, %s1400_s9  }
   0x9   : > { %s33_s17 = sadd.s32 1, %s1012_s13  ;;  %s42_s18 = sadd.s32 1, %s1004_s11 }
   0xa   : > { %p35_p0 = scmp.ge.s32.totalorder %s33_s17, 2  ;;  %p49_p1 = scmp.ne.s32.totalorder %s1004_s11, %s1000_s10 }
   0xb   : > { %p50_p2 = scmp.eq.s32.totalorder %s1016_s14, 0  ;;  %p55_p3 = scmp.ne.s32.totalorder %s1000_s10, %s996_s9 }
   0xc   : > { %s1406_s17 = smov (%p35_p0, %s33_s17), 0  ;;  %p56_p5 = scmp.eq.s32.totalorder %s687_s15, 0 }
   0xd   : > { %p1081_p4 = por %p50_p2, %p49_p1  ;;  %s39_s20 = ssub.s32 %s1012_s13, %s1406_s17 }
   0xe   : > { %p107_p6 = scmp.eq.s32.totalorder %s687_s15, 1  ;;  %p40_p7 = scmp.eq.s32.totalorder %s39_s20, 0 }
   0xf   : > { %p1087_p8 = por %p56_p5, %p55_p3  ;;  %p113_p10 = scmp.eq.s32.totalorder %s688_s16, 1 }
  0x10   : > { %p1091_p9 = por %p107_p6, %p49_p1  ;;  %p813_p13 = scmp.lt.s32.totalorder %s1016_s14, 2 }
  0x11   : > { %s1388_s21 = scalar_select %p1087_p8, 1, 0 }
  0x12   : > { %s1389_s22 = scalar_select %p1091_p9, 1, 0 }
  0x13   : > { %s1096_s23 = scalar_select %p40_p7, %s1004_s11, %s42_s18  }
  0x14   : > { %p1098_p11 = por %p113_p10, %p55_p3  ;;  %s1105_s25 = sand.u32 1, %s1004_s11  }
  0x15   : > { %s691_s26 = sshll.u32 %s1105_s25, 3  ;;  %s692_s27 = sshll.u32 %s1012_s13, 7 }
  0x16   : > { %s1390_s24 = scalar_select %p1098_p11, 1, 0 }
  0x17   : > { %s1114_s30 = scalar_lea.hbm %s1382_s0, %s692_s27  ;;  %s137_s3 = scalar_lea.vmem [#allocation2], %s691_s26 }
  0x18   : > { %s145_s4 = sshll.u32 %s137_s3, 4  ;;  %p1122_p0 = pnand %p813_p13, %p1081_p4  ;;  %s1118_s4 = int_to_ptr.vmem [resolvable:$true] %s145_s4 }
  0x19   : > { %s134_s6 = scalar_lea.sflag [#allocation3], %s1105_s25  ;;  %s870_s7 = scalar_lea.hbm %s1114_s30, 128 }
  0x1a   : > { %p871_p3 = scmp.ne.s32.totalorder %s1114_s30, %s870_s7  ;;  %p872_p5 = pneg %p1122_p0 }
  0x1b   : > { %s875_s16 = scalar_lea.hbm %s1382_s0, 256  ;;  %p876_p4 = scmp.lt.u32.totalorder %s1114_s30, %s1382_s0 }
  0x1c   : > { %p873_p6 = pnand %p872_p5, %p871_p3  ;;  %p877_p10 = scmp.lt.u32.totalorder %s875_s16, %s870_s7 }
  0x1d   : > { %p879_p12 = scmp.lt.u32.totalorder %s870_s7, %s1114_s30 }
  0x1e   : > { %p874_p7 = pneg %p873_p6  ;;  %p878_p13 = por %p877_p10, %p876_p4 }
  0x20   : > { %p880_p1 = por %p879_p12, %p878_p13 }
  0x22   : > { %p881_p2 = pnand %p880_p1, %p874_p7 }
  0x24   : > { %884 = shalt.err (!%p881_p2)
}
  0x25   : > { %s885_s20 = scalar_lea.vmem %s1118_s4, 128  ;;  %s1018_s28 = smov [#allocation2]  }
  0x26   : > { %p886_p3 = scmp.ne.s32.totalorder %s1118_s4, %s885_s20  ;;  %s890_s29 = sshll.u32 %s1018_s28, 4  ;;  %s891_s29 = int_to_ptr.vmem [resolvable:$false] %s890_s29 }
  0x27   : > { %s892_s3 = scalar_lea.vmem %s891_s29, 256  ;;  %p893_p9 = scmp.lt.s32.totalorder %s1118_s4, %s891_s29 }
  0x28   : > { %p888_p6 = pnand %p886_p3, %p872_p5  ;;  %p894_p4 = scmp.lt.s32.totalorder %s892_s3, %s885_s20 }
  0x2a   : > { %p889_p11 = pneg %p888_p6  ;;  %p895_p10 = por %p894_p4, %p893_p9 }
  0x2c   : > { %p896_p12 = pnand %p895_p10, %p889_p11 }
  0x2e   : > { %899 = shalt.err (!%p896_p12)
}
  0x2f   : > { %805 = dma.hbm_to_vmem [thread:$0]  (!%p1122_p0), %s1114_s30, 128, %s1118_s4, %s134_s6  }
  0x30   : > { %p1392_p1 = scmp.lt.s32.totalorder %s1016_s14, 3  ;;  %p1393_p2 = scmp.ge.s32.totalorder %s1016_s14, 1 }
  0x31   : > { %s1167_s16 = scalar_lea.hbm %s1383_s1, %s692_s27  ;;  %s156_s18 = scalar_lea.vmem [#allocation5], %s691_s26 }
  0x32   : > { %p1158_p7 = pnand %p1393_p2, %p1392_p1  ;;  %s164_s19 = sshll.u32 %s156_s18, 4  ;;  %s165_s19 = int_to_ptr.vmem [resolvable:$true] %s164_s19 }
  0x33   : > { %s153_s30 = scalar_lea.sflag [#allocation6], %s1105_s25  ;;  %s900_s4 = scalar_lea.hbm %s1167_s16, 128 }
  0x34   : > { %s1394_s7 = scalar_select %p1158_p7, 1, 0 }
  0x35   : > { %p901_p9 = scmp.ne.s32.totalorder %s1167_s16, %s900_s4  ;;  %s905_s27 = scalar_lea.hbm %s1383_s1, 256 }
  0x36   : > { %p906_p3 = scmp.lt.u32.totalorder %s1167_s16, %s1383_s1  ;;  %p907_p6 = scmp.lt.u32.totalorder %s905_s27, %s900_s4 }
  0x37   : > { %p903_p11 = pnand %p901_p9, %p872_p5  ;;  %p909_p10 = scmp.lt.u32.totalorder %s900_s4, %s1167_s16 }
  0x38   : > { %p908_p4 = por %p907_p6, %p906_p3 }
  0x39   : > { %p904_p13 = pneg %p903_p11 }
  0x3a   : > { %p910_p12 = por %p909_p10, %p908_p4 }
  0x3c   : > { %p911_p1 = pnand %p910_p12, %p904_p13 }
  0x3e   : > { %914 = shalt.err (!%p911_p1)
}
  0x3f   : > { %s915_s25 = scalar_lea.vmem %s165_s19, 128  ;;  %s1019_s26 = smov [#allocation5]  }
  0x40   : > { %p916_p2 = scmp.ne.s32.totalorder %s165_s19, %s915_s25  ;;  %s920_s3 = sshll.u32 %s1019_s26, 4  ;;  %s921_s3 = int_to_ptr.vmem [resolvable:$false] %s920_s3 }
  0x41   : > { %s922_s8 = scalar_lea.vmem %s921_s3, 256  ;;  %p923_p8 = scmp.lt.s32.totalorder %s165_s19, %s921_s3 }
  0x42   : > { %p918_p9 = pnand %p916_p2, %p872_p5  ;;  %p924_p7 = scmp.lt.s32.totalorder %s922_s8, %s915_s25 }
  0x44   : > { %p919_p11 = pneg %p918_p9  ;;  %p925_p3 = por %p924_p7, %p923_p8 }
  0x46   : > { %p926_p6 = pnand %p925_p3, %p919_p11 }
  0x48   : > { %929 = shalt.err (!%p926_p6)
}
  0x49   : > { %808 = dma.hbm_to_vmem [thread:$0]  (!%p1122_p0), %s1167_s16, 128, %s165_s19, %s153_s30  }
  0x4a   : > { %p1395_p13 = scmp.ne.s32.totalorder %s1394_s7, 0 }
  0x4b   : > { %s1194_s15 = sand.u32 (!%p1395_p13), 1, %s1000_s10   ;;  %p1396_p5 = scmp.ne.s32.totalorder (!%p1395_p13), %s1388_s21, 0 }
  0x4c   : > { %173 = sbr.rel (%p1395_p13) target bundleno = 151 (0x97), region = 28  ;;  %s696_s18 = sshll.u32 (!%p1395_p13), %s1194_s15, 3 }
  0x4d   : > { %s176_s4 = scalar_lea.sflag (!%p1395_p13), [#allocation3], %s1194_s15  ;;  %s179_s6 = scalar_lea.vmem (!%p1395_p13), [#allocation2], %s696_s18 }
  0x53   : > { %983 = dma.done.wait (%p1396_p5), %s176_s4, 128  }
  0x54   : > { %985 = vsyncadd (%p1396_p5), %s176_s4, 4294967168  ;;  %s185_s5 = scalar_lea.sflag [#allocation6], %s1194_s15  ;;  %s188_s16 = scalar_lea.vmem [#allocation5], %s696_s18 }
  0x55   : > { %987 = dma.done.wait (%p1396_p5), %s185_s5, 128  }
  0x56   : > { %989 = vsyncadd (%p1396_p5), %s185_s5, 4294967168  ;;  %s794_s7 = smul.u32 376, %s1194_s15  ;;  %v1020_v0 = vmov 1.0   ;;  %v267_v1 = vld [vmem:[%s179_s6] sm:$0xff]  ;;  %v1211_v2 = vld [vmem:[%s188_s16] sm:$0xff]  ;;  %v1021_v7 = vmov 0.0  }
  0x57   : > { %v698_v3 = vmul.f32 -1.442695, %v267_v1  ;;  %s795_s21 = smul.u32 6016, %s1008_s12  ;;  %s568_s28 = scalar_lea.sflag [#allocation4], %s1194_s15 }
  0x58   : > { %s1208_s19 = scalar_lea.vmem [#allocation7], %s794_s7  ;;  %p1397_p0 = scmp.ne.s32.totalorder %s1389_s22, 0 }
  0x59   : > { %782 = vst [vmem:[%s1208_s19 + $0x70] sm:$0xff] %v1020_v0  ;;  %866 = vpow2.f32 %v698_v3  ;;  %784 = vst [vmem:[%s1208_s19 + $0xe8] sm:$0xff] %v1211_v2  ;;  %s581_s30 = sshll.u32 %s1208_s19, 4  ;;  %s1328_s27 = scalar_lea.hbm %s1384_s2, %s795_s21  ;;  %s1330_s30 = int_to_ptr.vmem [resolvable:$true] %s581_s30 }
  0x5a   : > { %s930_s29 = scalar_lea.vmem %s1330_s30, 6016  ;;  %s1022_s25 = smov [#allocation7]  }
  0x5b   : > { %p931_p8 = scmp.ne.s32.totalorder %s1330_s30, %s930_s29  ;;  %s934_s26 = sshll.u32 %s1022_s25, 4  ;;  %s935_s26 = int_to_ptr.vmem [resolvable:$false] %s934_s26 }
  0x5c   : > { %s936_s3 = scalar_lea.vmem %s935_s26, 12032  ;;  %p937_p10 = scmp.lt.s32.totalorder %s1330_s30, %s935_s26 }
  0x5d   : > { %p932_p7 = pnand %p931_p8, %p1397_p0  ;;  %p938_p12 = scmp.lt.s32.totalorder %s936_s3, %s930_s29 }
  0x5f   : > { %p933_p4 = pneg %p932_p7  ;;  %p939_p1 = por %p938_p12, %p937_p10 }
  0x61   : > { %p940_p2 = pnand %p939_p1, %p933_p4 }
  0x63   : > { %v867_v4 = vpop.eup %866 }
  0x64   : > { %v272_v5 = vadd.f32 1.0, %v867_v4 }
  0x66   : > { %868 = vrcp.f32 %v272_v5 }
  0x70   : > { %v1215_v6 = vpop.eup %868 }
  0x71   : > { %vm275_vm0 = vcmp.le.f32.partialorder %v1215_v6, 0.06666667  ;;  %vm293_vm1 = vcmp.le.f32.partialorder %v1215_v6, 0.13333334  ;;  %vm312_vm2 = vcmp.le.f32.partialorder %v1215_v6, 0.2 }
  0x72   : > { %v277_v8 = vsel %vm275_vm0, 1.0, %v1021_v7  ;;  %v283_v9 = vsel %vm275_vm0, %v1211_v2, 0.0  ;;  %v289_v10 = vsel %vm275_vm0, %v1215_v6, 0.0  ;;  %v296_v11 = vsel %vm293_vm1, 1.0, %v1021_v7  ;;  %786 = vst [vmem:[%s1208_s19 + $0x160] sm:$0xff] %v1215_v6 }
  0x73   : > { %v302_v12 = vsel %vm293_vm1, %v1211_v2, 0.0  ;;  %v308_v13 = vsel %vm293_vm1, %v1215_v6, 0.0  ;;  %v315_v14 = vsel %vm312_vm2, 1.0, %v1021_v7  ;;  %v321_v15 = vsel %vm312_vm2, %v1211_v2, 0.0  ;;  %280 = vst [vmem:[%s1208_s19] sm:$0xff] %v277_v8  ;;  %700 = vst [vmem:[%s1208_s19 + $0x78] sm:$0xff] %v283_v9 }
  0x74   : > { %702 = vst [vmem:[%s1208_s19 + $0xf0] sm:$0xff] %v289_v10  ;;  %704 = vst [vmem:[%s1208_s19 + $0x8] sm:$0xff] %v296_v11  ;;  %v327_v16 = vsel %vm312_vm2, %v1215_v6, 0.0  ;;  %vm331_vm3 = vcmp.le.f32.partialorder %v1215_v6, 0.26666668  ;;  %vm554_vm9 = vcmp.le.f32.partialorder %v1215_v6, 0.0 }
  0x75   : > { %vm350_vm4 = vcmp.le.f32.partialorder %v1215_v6, 0.33333334  ;;  %706 = vst [vmem:[%s1208_s19 + $0x80] sm:$0xff] %v302_v12  ;;  %708 = vst [vmem:[%s1208_s19 + $0xf8] sm:$0xff] %v308_v13  ;;  %v334_v17 = vsel %vm331_vm3, 1.0, %v1021_v7  ;;  %v340_v18 = vsel %vm331_vm3, %v1211_v2, 0.0 }
  0x76   : > { %710 = vst [vmem:[%s1208_s19 + $0x10] sm:$0xff] %v315_v14  ;;  %712 = vst [vmem:[%s1208_s19 + $0x88] sm:$0xff] %v321_v15  ;;  %v346_v19 = vsel %vm331_vm3, %v1215_v6, 0.0  ;;  %v353_v20 = vsel %vm350_vm4, 1.0, %v1021_v7  ;;  %v359_v21 = vsel %vm350_vm4, %v1211_v2, 0.0  ;;  %v365_v22 = vsel %vm350_vm4, %v1215_v6, 0.0 }
  0x77   : > { %714 = vst [vmem:[%s1208_s19 + $0x100] sm:$0xff] %v327_v16  ;;  %vm369_vm5 = vcmp.le.f32.partialorder %v1215_v6, 0.4  ;;  %716 = vst [vmem:[%s1208_s19 + $0x18] sm:$0xff] %v334_v17  ;;  %vm388_vm6 = vcmp.le.f32.partialorder %v1215_v6, 0.46666667 }
  0x78   : > { %718 = vst [vmem:[%s1208_s19 + $0x90] sm:$0xff] %v340_v18  ;;  %720 = vst [vmem:[%s1208_s19 + $0x108] sm:$0xff] %v346_v19  ;;  %v372_v23 = vsel %vm369_vm5, 1.0, %v1021_v7  ;;  %v378_v24 = vsel %vm369_vm5, %v1211_v2, 0.0  ;;  %v384_v25 = vsel %vm369_vm5, %v1215_v6, 0.0  ;;  %v391_v26 = vsel %vm388_vm6, 1.0, %v1021_v7 }
  0x79   : > { %722 = vst [vmem:[%s1208_s19 + $0x20] sm:$0xff] %v353_v20  ;;  %724 = vst [vmem:[%s1208_s19 + $0x98] sm:$0xff] %v359_v21  ;;  %v397_v27 = vsel %vm388_vm6, %v1211_v2, 0.0  ;;  %v403_v28 = vsel %vm388_vm6, %v1215_v6, 0.0  ;;  %vm407_vm7 = vcmp.le.f32.partialorder %v1215_v6, 0.53333336 }
  0x7a   : > { %726 = vst [vmem:[%s1208_s19 + $0x110] sm:$0xff] %v365_v22  ;;  %728 = vst [vmem:[%s1208_s19 + $0x28] sm:$0xff] %v372_v23  ;;  %v410_v29 = vsel %vm407_vm7, 1.0, %v1021_v7  ;;  %v416_v30 = vsel %vm407_vm7, %v1211_v2, 0.0  ;;  %v422_v31 = vsel %vm407_vm7, %v1215_v6, 0.0  ;;  %v557_v50 = vsel %vm554_vm9, 1.0, %v1021_v7 }
  0x7b   : > { %730 = vst [vmem:[%s1208_s19 + $0xa0] sm:$0xff] %v378_v24  ;;  %732 = vst [vmem:[%s1208_s19 + $0x118] sm:$0xff] %v384_v25  ;;  %vm426_vm8 = vcmp.le.f32.partialorder %v1215_v6, 0.6  ;;  %vm445_vm10 = vcmp.le.f32.partialorder %v1215_v6, 0.6666667 }
  0x7c   : > { %734 = vst [vmem:[%s1208_s19 + $0x30] sm:$0xff] %v391_v26  ;;  %736 = vst [vmem:[%s1208_s19 + $0xa8] sm:$0xff] %v397_v27  ;;  %v429_v32 = vsel %vm426_vm8, 1.0, %v1021_v7  ;;  %v435_v33 = vsel %vm426_vm8, %v1211_v2, 0.0  ;;  %v441_v34 = vsel %vm426_vm8, %v1215_v6, 0.0  ;;  %v448_v35 = vsel %vm445_vm10, 1.0, %v1021_v7 }
  0x7d   : > { %738 = vst [vmem:[%s1208_s19 + $0x120] sm:$0xff] %v403_v28  ;;  %740 = vst [vmem:[%s1208_s19 + $0x38] sm:$0xff] %v410_v29  ;;  %v454_v36 = vsel %vm445_vm10, %v1211_v2, 0.0  ;;  %v460_v37 = vsel %vm445_vm10, %v1215_v6, 0.0  ;;  %vm464_vm11 = vcmp.le.f32.partialorder %v1215_v6, 0.73333335 }
  0x7e   : > { %742 = vst [vmem:[%s1208_s19 + $0xb0] sm:$0xff] %v416_v30  ;;  %744 = vst [vmem:[%s1208_s19 + $0x128] sm:$0xff] %v422_v31  ;;  %v467_v38 = vsel %vm464_vm11, 1.0, %v1021_v7  ;;  %v473_v39 = vsel %vm464_vm11, %v1211_v2, 0.0  ;;  %v479_v40 = vsel %vm464_vm11, %v1215_v6, 0.0  ;;  %v563_v51 = vsel %vm554_vm9, %v1211_v2, 0.0 }
  0x7f   : > { %746 = vst [vmem:[%s1208_s19 + $0x40] sm:$0xff] %v429_v32  ;;  %748 = vst [vmem:[%s1208_s19 + $0xb8] sm:$0xff] %v435_v33  ;;  %vm483_vm12 = vcmp.le.f32.partialorder %v1215_v6, 0.8  ;;  %vm502_vm13 = vcmp.le.f32.partialorder %v1215_v6, 0.8666667 }
  0x80   : > { %750 = vst [vmem:[%s1208_s19 + $0x130] sm:$0xff] %v441_v34  ;;  %752 = vst [vmem:[%s1208_s19 + $0x48] sm:$0xff] %v448_v35  ;;  %v486_v41 = vsel %vm483_vm12, 1.0, %v1021_v7  ;;  %v492_v42 = vsel %vm483_vm12, %v1211_v2, 0.0  ;;  %v498_v43 = vsel %vm483_vm12, %v1215_v6, 0.0  ;;  %v505_v44 = vsel %vm502_vm13, 1.0, %v1021_v7 }
  0x81   : > { %754 = vst [vmem:[%s1208_s19 + $0xc0] sm:$0xff] %v454_v36  ;;  %756 = vst [vmem:[%s1208_s19 + $0x138] sm:$0xff] %v460_v37  ;;  %v511_v45 = vsel %vm502_vm13, %v1211_v2, 0.0  ;;  %v517_v46 = vsel %vm502_vm13, %v1215_v6, 0.0  ;;  %vm521_vm14 = vcmp.le.f32.partialorder %v1215_v6, 0.93333334 }
  0x82   : > { %758 = vst [vmem:[%s1208_s19 + $0x50] sm:$0xff] %v467_v38  ;;  %760 = vst [vmem:[%s1208_s19 + $0xc8] sm:$0xff] %v473_v39  ;;  %v524_v47 = vsel %vm521_vm14, 1.0, %v1021_v7  ;;  %v530_v48 = vsel %vm521_vm14, %v1211_v2, 0.0  ;;  %v536_v49 = vsel %vm521_vm14, %v1215_v6, 0.0 }
  0x83   : > { %762 = vst [vmem:[%s1208_s19 + $0x140] sm:$0xff] %v479_v40  ;;  %764 = vst [vmem:[%s1208_s19 + $0x58] sm:$0xff] %v486_v41 }
  0x84   : > { %766 = vst [vmem:[%s1208_s19 + $0xd0] sm:$0xff] %v492_v42  ;;  %768 = vst [vmem:[%s1208_s19 + $0x148] sm:$0xff] %v498_v43 }
  0x85   : > { %770 = vst [vmem:[%s1208_s19 + $0x60] sm:$0xff] %v505_v44  ;;  %772 = vst [vmem:[%s1208_s19 + $0xd8] sm:$0xff] %v511_v45 }
  0x86   : > { %774 = vst [vmem:[%s1208_s19 + $0x150] sm:$0xff] %v517_v46  ;;  %776 = vst [vmem:[%s1208_s19 + $0x68] sm:$0xff] %v524_v47 }
  0x87   : > { %778 = vst [vmem:[%s1208_s19 + $0xe0] sm:$0xff] %v530_v48  ;;  %780 = vst [vmem:[%s1208_s19 + $0x158] sm:$0xff] %v536_v49 }
  0x88   : > { %788 = vst [vmem:[%s1208_s19 + $0x168] sm:$0xff] %v557_v50  ;;  %790 = vst [vmem:[%s1208_s19 + $0x170] sm:$0xff] %v563_v51 }
  0x89   : > { %943 = shalt.err (!%p940_p2)
}
  0x8a   : > { %s944_s8 = scalar_lea.hbm %s1328_s27, 6016  ;;  %s948_s6 = scalar_lea.hbm %s1384_s2, 12032 }
  0x8b   : > { %p945_p9 = scmp.ne.s32.totalorder %s1328_s27, %s944_s8  ;;  %p949_p6 = scmp.lt.u32.totalorder %s1328_s27, %s1384_s2 }
  0x8c   : > { %p950_p13 = scmp.lt.u32.totalorder %s948_s6, %s944_s8  ;;  %p952_p8 = scmp.lt.u32.totalorder %s944_s8, %s1328_s27 }
  0x8d   : > { %p946_p11 = pnand %p945_p9, %p1397_p0 }
  0x8e   : > { %p951_p5 = por %p950_p13, %p949_p6 }
  0x8f   : > { %p947_p3 = pneg %p946_p11 }
  0x90   : > { %p953_p7 = por %p952_p8, %p951_p5 }
  0x92   : > { %p954_p4 = pnand %p953_p7, %p947_p3 }
  0x94   : > { %957 = shalt.err (!%p954_p4)
}
  0x95   : > { %s1023_s7 = smov 128   ;;  %s1024_s19 = smov 8  }
  0x96   : > { %800 = dma.vmem_to_hbm [thread:$0]  (%p1397_p0), %s1330_s30, 6016, %s1328_s27, %s568_s28, %s1023_s7, %s1023_s7, %s1024_s19  }
  0x97 PF: > { %s596_s21 = sand.u32 1, %s996_s9   ;;  %p1398_p10 = scmp.ne.s32.totalorder %s1390_s24, 0 }
  0x98   : > { %p1399_p12 = scmp.ge.s32.totalorder %s1016_s14, 2  ;;  %s597_s12 = scalar_lea.sflag [#allocation4], %s596_s21 }
  0x9a   : > { %p810_p1 = pnand %p1399_p12, %p1398_p10 }
  0x9c   : > { %991 = dma.done.wait (!%p810_p1), %s597_s12, 6016  }
  0x9d   : > { %993 = vsyncadd (!%p810_p1), %s597_s12, 4294961280  ;;  %s21_s14 = sadd.s32 1, %s1016_s14   ;;  %s1400_s9 = smov %s1000_s10 }
  0x9e   : > { %p18_p2 = scmp.ge.s32.totalorder %s21_s14, 4   ;;  %s1401_s10 = smov %s1004_s11 }
  0x9f   : > { %s1402_s11 = smov %s1096_s23  ;;  %s1403_s12 = smov %s1012_s13 }
  0xa0   : > { %s1404_s13 = smov %s1406_s17  ;;  %20 = sbr.rel (!%p18_p2) target bundleno = 8 (0x8), region = 136 }
  0xa7   :  { %602 = vsyncpa [#allocation3], 1 }
  0xa8   :  { %604 = vsyncpa [#allocation3 + $0x1], 1 }
  0xa9   :  { %605 = vsyncpa [#allocation6], 1 }
  0xaa   :  { %607 = vsyncpa [#allocation6 + $0x1], 1 }
  0xab   :  { %608 = vsyncpa [#allocation4], 1 }
  0xac   :  { %610 = vsyncpa [#allocation4 + $0x1], 1 }

</bundles_post_ra>
